<compile_context>
chip_gen: v7x
topology: tpu7x:2x2x1
jax: 0.10.0
libtpu: 0.0.40
codegen_flags: <defaults>
</compile_context>

<pallas_src>
import functools

import numpy as np
import jax
import jax.numpy as jnp
from jax.experimental import pallas as pl
from jax.experimental.pallas import tpu as pltpu


# ---------------------------------------------------------------------------
# Fused kernel: block1 -> block2 -> CBAM -> residual, one image per grid step.
# ---------------------------------------------------------------------------
def _resnet_block_kernel(x_ref, g1_ref, w1_ref, b1_ref, g2_ref, w2_ref, b2_ref,
                         m1_ref, bm1_ref, m2_ref, bm2_ref, msp_ref, bn_ref,
                         out_ref, pad_ref, *, H, W, C):
    # x_ref   : (1, H, W, C)  NHWC input block
    # g*_ref  : (1, C)        LayerNorm gains (no bias)
    # w*_ref  : (9*C, C)      im2col 3x3 conv weights, tap t = dy*3 + dx
    # b*_ref  : (1, C)        conv biases
    # m1/bm1/m2/bm2           CBAM channel-gate MLP weights
    # msp_ref : (H*W, 2*H*W)  dense matrix realizing conv7x7(pad=3) over the
    #                         stacked [max_c; mean_c] maps
    # bn_ref  : SMEM (2,)     eval-mode BatchNorm folded into (scale, shift)
    # out_ref : (1, H, W, C)
    # pad_ref : VMEM (H+2, W+2, C) scratch: zero border + LN/ReLU interior
    eps = 1e-5
    N = H * W

    # Zero the padded plane once per image; only the interior is rewritten per
    # stage (LN gain-only + ReLU keep the border exactly zero for both convs).
    pad_ref[...] = jnp.zeros(pad_ref.shape, pad_ref.dtype)

    def ln_relu_conv3x3(v3, g_ref, w_ref, b_ref):
        # v3: (H, W, C) f32.  LayerNorm(channel) -> ReLU -> Conv3x3(pad=1).
        mean = jnp.mean(v3, axis=-1, keepdims=True)
        var = jnp.mean(jnp.square(v3 - mean), axis=-1, keepdims=True)
        a = jnp.maximum((v3 - mean) * jax.lax.rsqrt(var + eps) * g_ref[...], 0.0)
        pad_ref[1:1 + H, 1:1 + W, :] = a
        # im2col: single (N, 9C) patch matrix -> ONE MXU matmul with K = 9*C.
        patches = jnp.concatenate(
            [pad_ref[dy:dy + H, dx:dx + W, :].reshape(N, C)
             for dy in range(3) for dx in range(3)], axis=-1)
        acc = jnp.dot(patches.astype(w_ref.dtype), w_ref[...],
                      preferred_element_type=jnp.float32)
        return acc + b_ref[...]                                      # (N, C) f32

    x3 = x_ref[0].astype(jnp.float32)                                # (H, W, C)
    h = ln_relu_conv3x3(x3, g1_ref, w1_ref, b1_ref)                  # block1
    h = ln_relu_conv3x3(h.reshape(H, W, C), g2_ref, w2_ref, b2_ref)  # block2

    # ---- CBAM channel gate: one MLP pass over stacked [avg; max] (2, C) ----
    pooled = jnp.concatenate([jnp.mean(h, axis=0, keepdims=True),
                              jnp.max(h, axis=0, keepdims=True)], axis=0)
    t = jnp.dot(pooled, m1_ref[...], preferred_element_type=jnp.float32) + bm1_ref[...]
    t = jnp.maximum(t, 0.0)
    att2 = jnp.dot(t, m2_ref[...], preferred_element_type=jnp.float32) + bm2_ref[...]
    att = att2[0:1, :] + att2[1:2, :]                                # (1, C)
    cgate = 1.0 / (1.0 + jnp.exp(-att))
    hc = h * cgate                                                   # (N, C)

    # ---- CBAM spatial gate: sigmoid(BN(conv7x7([max_c, mean_c]))) as 1 matmul ----
    p = jnp.concatenate([jnp.max(hc, axis=-1, keepdims=True),
                         jnp.mean(hc, axis=-1, keepdims=True)], axis=0)   # (2N, 1)
    logits = jnp.dot(msp_ref[...], p, preferred_element_type=jnp.float32)  # (N, 1)
    sgate = 1.0 / (1.0 + jnp.exp(-(logits * bn_ref[0] + bn_ref[1])))

    out = hc * sgate + x3.reshape(N, C)                              # residual add
    out_ref[0] = out.reshape(H, W, C).astype(out_ref.dtype)


def _spatial_conv_matrix(wsp, H, W, KS=7):
    """Dense (H*W, 2*H*W) matrix M so conv7x7_pad3([max; mean]) == M @ [max; mean]."""
    pad = (KS - 1) // 2
    N = H * W
    rows, cols, taps = [], [], []
    for c in range(2):
        for dy in range(KS):
            for dx in range(KS):
                for y in range(H):
                    iy = y + dy - pad
                    if iy < 0 or iy >= H:
                        continue
                    for x in range(W):
                        ix = x + dx - pad
                        if ix < 0 or ix >= W:
                            continue
                        rows.append(y * W + x)
                        cols.append(c * N + iy * W + ix)
                        taps.append(c * KS * KS + dy * KS + dx)
    m = jnp.zeros((N, 2 * N), jnp.float32)
    return m.at[np.asarray(rows), np.asarray(cols)].set(
        wsp.reshape(-1)[np.asarray(taps)])


@functools.partial(jax.jit, static_argnames=("mxu_dtype",))
def resnet_block_pallas(x, g1, w1, b1, g2, w2, b2, m1, bm1, m2, bm2, wsp, bn_vec,
                        mxu_dtype=jnp.float32):
    """x: (B, C, H, W) NCHW; conv weights in PyTorch OIHW layout.

    Single fused pallas_call gridded over batch: the activation stays in VMEM
    between block1 / block2 / CBAM / residual.  mxu_dtype=jnp.bfloat16 feeds
    the conv matmuls bf16 operands (f32 accumulation) on v6e/v7x.
    """
    B, C, H, W = x.shape
    N = H * W
    Cr = m1.shape[1]
    xl = jnp.transpose(x, (0, 2, 3, 1))                              # NCHW -> NHWC

    def im2col_w(w):  # OIHW (Cout, Cin, 3, 3) -> (9*Cin, Cout), tap t = dy*3 + dx
        return jnp.transpose(w, (2, 3, 1, 0)).reshape(
            9 * w.shape[1], w.shape[0]).astype(mxu_dtype)

    msp = _spatial_conv_matrix(wsp, H, W)

    kernel = functools.partial(_resnet_block_kernel, H=H, W=W, C=C)
    full2 = lambda i: (0, 0)
    out = pl.pallas_call(
        kernel,
        out_shape=jax.ShapeDtypeStruct((B, H, W, C), jnp.float32),
        grid_spec=pltpu.PrefetchScalarGridSpec(
            num_scalar_prefetch=0,
            grid=(B,),
            in_specs=[
                pl.BlockSpec((1, H, W, C), lambda i: (i, 0, 0, 0)),
                pl.BlockSpec((1, C), full2),
                pl.BlockSpec((9 * C, C), full2),
                pl.BlockSpec((1, C), full2),
                pl.BlockSpec((1, C), full2),
                pl.BlockSpec((9 * C, C), full2),
                pl.BlockSpec((1, C), full2),
                pl.BlockSpec((C, Cr), full2),
                pl.BlockSpec((1, Cr), full2),
                pl.BlockSpec((Cr, C), full2),
                pl.BlockSpec((1, C), full2),
                pl.BlockSpec((N, 2 * N), full2),
                pl.BlockSpec(memory_space=pltpu.MemorySpace.SMEM),
            ],
            out_specs=pl.BlockSpec((1, H, W, C), lambda i: (i, 0, 0, 0)),
            scratch_shapes=[pltpu.VMEM((H + 2, W + 2, C), jnp.float32)],
        ),
        compiler_params=pltpu.CompilerParams(
            dimension_semantics=("parallel",),
            vmem_limit_bytes=48 * 1024 * 1024),
    )(xl, g1.reshape(1, C), im2col_w(w1), b1.reshape(1, C),
      g2.reshape(1, C), im2col_w(w2), b2.reshape(1, C),
      m1, bm1.reshape(1, Cr), m2, bm2.reshape(1, C), msp, bn_vec)
    return jnp.transpose(out, (0, 3, 1, 2))                          # back to NCHW


# ---------------------------------------------------------------------------
# Pure-JAX reference mirroring the PyTorch ResNetBlock forward pass.
# ---------------------------------------------------------------------------
def resnet_block_reference(x, g1, w1, b1, g2, w2, b2, m1, bm1, m2, bm2, wsp,
                           bn_scale, bn_shift):
    eps = 1e-5

    def ln_relu(t, g):
        mean = jnp.mean(t, axis=1, keepdims=True)
        var = jnp.mean(jnp.square(t - mean), axis=1, keepdims=True)
        return jax.nn.relu((t - mean) * jax.lax.rsqrt(var + eps) * g.reshape(1, -1, 1, 1))

    def conv3x3(t, w, b):
        y = jax.lax.conv_general_dilated(t, w, (1, 1), ((1, 1), (1, 1)),
                                         dimension_numbers=("NCHW", "OIHW", "NCHW"))
        return y + b.reshape(1, -1, 1, 1)

    h = conv3x3(ln_relu(x, g1), w1, b1)
    h = conv3x3(ln_relu(h, g2), w2, b2)

    # CBAM channel gate
    avg = jnp.mean(h, axis=(2, 3))
    mx = jnp.max(h, axis=(2, 3))

    def mlp(v):
        return jax.nn.relu(v @ m1 + bm1) @ m2 + bm2

    cscale = jax.nn.sigmoid(mlp(avg) + mlp(mx))
    hc = h * cscale[:, :, None, None]

    # CBAM spatial gate (eval-mode BN folded into scale/shift)
    comp = jnp.concatenate([jnp.max(hc, axis=1, keepdims=True),
                            jnp.mean(hc, axis=1, keepdims=True)], axis=1)
    sp = jax.lax.conv_general_dilated(comp, wsp[None], (1, 1), ((3, 3), (3, 3)),
                                      dimension_numbers=("NCHW", "OIHW", "NCHW"))
    sscale = jax.nn.sigmoid(sp * bn_scale + bn_shift)
    return hc * sscale + x


if __name__ == "__main__":
    # Small shapes consistent with the module: dim=32, spatial 8x8, batch 2.
    B, C, H, W = 2, 32, 8, 8
    RATIO = min(C // 3, 16)          # CBAM reduction ratio as used in ResNetBlock
    CR = C // RATIO                  # hidden width of the channel-gate MLP

    key = jax.random.PRNGKey(0)
    ks = jax.random.split(key, 12)
    x = jax.random.normal(ks[0], (B, C, H, W), jnp.float32)

    g1 = 1.0 + 0.1 * jax.random.normal(ks[1], (C,), jnp.float32)
    w1 = 0.1 * jax.random.normal(ks[2], (C, C, 3, 3), jnp.float32)
    b1 = 0.1 * jax.random.normal(ks[3], (C,), jnp.float32)
    g2 = 1.0 + 0.1 * jax.random.normal(ks[4], (C,), jnp.float32)
    w2 = 0.1 * jax.random.normal(ks[5], (C, C, 3, 3), jnp.float32)
    b2 = 0.1 * jax.random.normal(ks[6], (C,), jnp.float32)

    m1 = 0.3 * jax.random.normal(ks[7], (C, CR), jnp.float32)    # Linear(C, C//r).T
    bm1 = 0.1 * jax.random.normal(ks[8], (CR,), jnp.float32)
    m2 = 0.3 * jax.random.normal(ks[9], (CR, C), jnp.float32)    # Linear(C//r, C).T
    bm2 = 0.1 * jax.random.normal(ks[10], (C,), jnp.float32)

    wsp = 0.1 * jax.random.normal(ks[11], (2, 7, 7), jnp.float32)  # Conv2d(2,1,7), no bias
    # Eval-mode BatchNorm2d(1) folded into scale/shift.
    bn_gamma, bn_beta, bn_mean, bn_var = 1.1, 0.05, 0.02, 0.8
    bn_scale = bn_gamma / (bn_var + 1e-5) ** 0.5
    bn_shift = bn_beta - bn_mean * bn_scale
    bn_vec = jnp.array([bn_scale, bn_shift], jnp.float32)

    args = (x, g1, w1, b1, g2, w2, b2, m1, bm1, m2, bm2, wsp, bn_vec)

    # f32 MXU path: strict correctness check vs the pure-JAX reference.
    y = jax.block_until_ready(resnet_block_pallas(*args))
    y_ref = resnet_block_reference(x, g1, w1, b1, g2, w2, b2, m1, bm1, m2, bm2,
                                   wsp, bn_scale, bn_shift)
    assert y.shape == (B, C, H, W)
    err = float(jnp.max(jnp.abs(y - y_ref)))
    assert jnp.allclose(y, y_ref, atol=1e-3, rtol=1e-3), \
        "f32 mismatch vs reference: max abs err = %g" % err

    # bf16-operand MXU path (perf option for v6e/v7x): loose sanity check only.
    y_bf16 = jax.block_until_ready(resnet_block_pallas(*args, mxu_dtype=jnp.bfloat16))
    assert jnp.allclose(y_bf16, y_ref, atol=1e-1, rtol=1e-1), \
        "bf16 MXU path diverged from reference"

    print("KERNEL_OK")
</pallas_src>

<mosaic_0001>
module attributes {stable_mosaic.version = 11 : i64} {
  func.func @_resnet_block_kernel(%arg0: i32, %arg1: memref<1x8x8x32xf32, #tpu.memory_space<vmem>>, %arg2: memref<1x32xf32, #tpu.memory_space<vmem>>, %arg3: memref<288x32xf32, #tpu.memory_space<vmem>>, %arg4: memref<1x32xf32, #tpu.memory_space<vmem>>, %arg5: memref<1x32xf32, #tpu.memory_space<vmem>>, %arg6: memref<288x32xf32, #tpu.memory_space<vmem>>, %arg7: memref<1x32xf32, #tpu.memory_space<vmem>>, %arg8: memref<32x3xf32, #tpu.memory_space<vmem>>, %arg9: memref<1x3xf32, #tpu.memory_space<vmem>>, %arg10: memref<3x32xf32, #tpu.memory_space<vmem>>, %arg11: memref<1x32xf32, #tpu.memory_space<vmem>>, %arg12: memref<64x128xf32, #tpu.memory_space<vmem>>, %arg13: memref<2xf32, #tpu.memory_space<smem>>, %arg14: memref<1x8x8x32xf32, #tpu.memory_space<vmem>>, %arg15: memref<10x10x32xf32, #tpu.memory_space<vmem>>) attributes {dimension_semantics = [#tpu.dimension_semantics<parallel>], iteration_bounds = array<i64: 2>, scalar_prefetch = 0 : i64, scratch_operands = 1 : i64, tpu.core_type = #tpu.core_type<tc>, window_params = [{transform_indices = @transform_0, window_bounds = array<i64: 1, 8, 8, 32>}, {pipeline_mode = #tpu.pipeline_mode<synchronous>, transform_indices = @transform_1, window_bounds = array<i64: 1, 32>}, {pipeline_mode = #tpu.pipeline_mode<synchronous>, transform_indices = @transform_2, window_bounds = array<i64: 288, 32>}, {pipeline_mode = #tpu.pipeline_mode<synchronous>, transform_indices = @transform_3, window_bounds = array<i64: 1, 32>}, {pipeline_mode = #tpu.pipeline_mode<synchronous>, transform_indices = @transform_4, window_bounds = array<i64: 1, 32>}, {pipeline_mode = #tpu.pipeline_mode<synchronous>, transform_indices = @transform_5, window_bounds = array<i64: 288, 32>}, {pipeline_mode = #tpu.pipeline_mode<synchronous>, transform_indices = @transform_6, window_bounds = array<i64: 1, 32>}, {pipeline_mode = #tpu.pipeline_mode<synchronous>, transform_indices = @transform_7, window_bounds = array<i64: 32, 3>}, {pipeline_mode = #tpu.pipeline_mode<synchronous>, transform_indices = @transform_8, window_bounds = array<i64: 1, 3>}, {pipeline_mode = #tpu.pipeline_mode<synchronous>, transform_indices = @transform_9, window_bounds = array<i64: 3, 32>}, {pipeline_mode = #tpu.pipeline_mode<synchronous>, transform_indices = @transform_10, window_bounds = array<i64: 1, 32>}, {pipeline_mode = #tpu.pipeline_mode<synchronous>, transform_indices = @transform_11, window_bounds = array<i64: 64, 128>}, {transform_indices = @transform_12, window_bounds = array<i64: 2>}, {transform_indices = @transform_13, window_bounds = array<i64: 1, 8, 8, 32>}]} {
    %cst = arith.constant 0.000000e+00 : f32
    %0 = vector.broadcast %cst : f32 to vector<10x10x32xf32>
    %c0 = arith.constant 0 : index
    %c0_0 = arith.constant 0 : index
    %c0_1 = arith.constant 0 : index
    %1 = vector.load %arg15[%c0, %c0_0, %c0_1] : memref<10x10x32xf32, #tpu.memory_space<vmem>>, vector<10x10x32xf32>
    tpu.vector_store %arg15[%c0, %c0_0, %c0_1], %0 {strides = array<i32>} : memref<10x10x32xf32, #tpu.memory_space<vmem>>, vector<10x10x32xf32>,
    %c0_2 = arith.constant 0 : index
    %c0_3 = arith.constant 0 : index
    %c0_4 = arith.constant 0 : index
    %c0_5 = arith.constant 0 : index
    %2 = vector.load %arg1[%c0_2, %c0_3, %c0_4, %c0_5] : memref<1x8x8x32xf32, #tpu.memory_space<vmem>>, vector<1x8x8x32xf32>
    %3 = vector.shape_cast %2 : vector<1x8x8x32xf32> to vector<8x8x32xf32>
    %cst_6 = arith.constant dense<0.000000e+00> : vector<8x8xf32>
    %4 = vector.multi_reduction <add>, %3, %cst_6 [2] : vector<8x8x32xf32> to vector<8x8xf32>
    %5 = vector.shape_cast %4 : vector<8x8xf32> to vector<8x8x1xf32>
    %cst_7 = arith.constant 3.200000e+01 : f32
    %6 = vector.broadcast %cst_7 : f32 to vector<8x8x1xf32>
    %7 = arith.divf %5, %6 : vector<8x8x1xf32>
    %8 = vector.broadcast %7 : vector<8x8x1xf32> to vector<8x8x32xf32>
    %9 = arith.subf %3, %8 : vector<8x8x32xf32>
    %10 = arith.mulf %9, %9 : vector<8x8x32xf32>
    %cst_8 = arith.constant dense<0.000000e+00> : vector<8x8xf32>
    %11 = vector.multi_reduction <add>, %10, %cst_8 [2] : vector<8x8x32xf32> to vector<8x8xf32>
    %12 = vector.shape_cast %11 : vector<8x8xf32> to vector<8x8x1xf32>
    %cst_9 = arith.constant 3.200000e+01 : f32
    %13 = vector.broadcast %cst_9 : f32 to vector<8x8x1xf32>
    %14 = arith.divf %12, %13 : vector<8x8x1xf32>
    %15 = vector.broadcast %7 : vector<8x8x1xf32> to vector<8x8x32xf32>
    %16 = arith.subf %3, %15 : vector<8x8x32xf32>
    %cst_10 = arith.constant 9.99999974E-6 : f32
    %17 = vector.broadcast %cst_10 : f32 to vector<8x8x1xf32>
    %18 = arith.addf %14, %17 : vector<8x8x1xf32>
    %19 = math.rsqrt %18 : vector<8x8x1xf32>
    %20 = vector.broadcast %19 : vector<8x8x1xf32> to vector<8x8x32xf32>
    %21 = arith.mulf %16, %20 : vector<8x8x32xf32>
    %c0_11 = arith.constant 0 : index
    %c0_12 = arith.constant 0 : index
    %22 = vector.load %arg2[%c0_11, %c0_12] : memref<1x32xf32, #tpu.memory_space<vmem>>, vector<1x32xf32>
    %23 = vector.shape_cast %22 : vector<1x32xf32> to vector<1x1x32xf32>
    %24 = vector.broadcast %23 : vector<1x1x32xf32> to vector<8x8x32xf32>
    %25 = arith.mulf %21, %24 : vector<8x8x32xf32>
    %cst_13 = arith.constant 0.000000e+00 : f32
    %26 = vector.broadcast %cst_13 : f32 to vector<8x8x32xf32>
    %27 = arith.maximumf %25, %26 : vector<8x8x32xf32>
    %c1 = arith.constant 1 : index
    %c1_14 = arith.constant 1 : index
    %c0_15 = arith.constant 0 : index
    %28 = vector.load %arg15[%c1, %c1_14, %c0_15] : memref<10x10x32xf32, #tpu.memory_space<vmem>>, vector<8x8x32xf32>
    tpu.vector_store %arg15[%c1, %c1_14, %c0_15], %27 {strides = array<i32>} : memref<10x10x32xf32, #tpu.memory_space<vmem>>, vector<8x8x32xf32>,
    %c0_16 = arith.constant 0 : index
    %c0_17 = arith.constant 0 : index
    %c0_18 = arith.constant 0 : index
    %29 = vector.load %arg15[%c0_16, %c0_17, %c0_18] : memref<10x10x32xf32, #tpu.memory_space<vmem>>, vector<8x8x32xf32>
    %30 = vector.shape_cast %29 : vector<8x8x32xf32> to vector<64x32xf32>
    %c0_19 = arith.constant 0 : index
    %c1_20 = arith.constant 1 : index
    %c0_21 = arith.constant 0 : index
    %31 = vector.load %arg15[%c0_19, %c1_20, %c0_21] : memref<10x10x32xf32, #tpu.memory_space<vmem>>, vector<8x8x32xf32>
    %32 = vector.shape_cast %31 : vector<8x8x32xf32> to vector<64x32xf32>
    %c0_22 = arith.constant 0 : index
    %c2 = arith.constant 2 : index
    %c0_23 = arith.constant 0 : index
    %33 = vector.load %arg15[%c0_22, %c2, %c0_23] : memref<10x10x32xf32, #tpu.memory_space<vmem>>, vector<8x8x32xf32>
    %34 = vector.shape_cast %33 : vector<8x8x32xf32> to vector<64x32xf32>
    %c1_24 = arith.constant 1 : index
    %c0_25 = arith.constant 0 : index
    %c0_26 = arith.constant 0 : index
    %35 = vector.load %arg15[%c1_24, %c0_25, %c0_26] : memref<10x10x32xf32, #tpu.memory_space<vmem>>, vector<8x8x32xf32>
    %36 = vector.shape_cast %35 : vector<8x8x32xf32> to vector<64x32xf32>
    %c1_27 = arith.constant 1 : index
    %c1_28 = arith.constant 1 : index
    %c0_29 = arith.constant 0 : index
    %37 = vector.load %arg15[%c1_27, %c1_28, %c0_29] : memref<10x10x32xf32, #tpu.memory_space<vmem>>, vector<8x8x32xf32>
    %38 = vector.shape_cast %37 : vector<8x8x32xf32> to vector<64x32xf32>
    %c1_30 = arith.constant 1 : index
    %c2_31 = arith.constant 2 : index
    %c0_32 = arith.constant 0 : index
    %39 = vector.load %arg15[%c1_30, %c2_31, %c0_32] : memref<10x10x32xf32, #tpu.memory_space<vmem>>, vector<8x8x32xf32>
    %40 = vector.shape_cast %39 : vector<8x8x32xf32> to vector<64x32xf32>
    %c2_33 = arith.constant 2 : index
    %c0_34 = arith.constant 0 : index
    %c0_35 = arith.constant 0 : index
    %41 = vector.load %arg15[%c2_33, %c0_34, %c0_35] : memref<10x10x32xf32, #tpu.memory_space<vmem>>, vector<8x8x32xf32>
    %42 = vector.shape_cast %41 : vector<8x8x32xf32> to vector<64x32xf32>
    %c2_36 = arith.constant 2 : index
    %c1_37 = arith.constant 1 : index
    %c0_38 = arith.constant 0 : index
    %43 = vector.load %arg15[%c2_36, %c1_37, %c0_38] : memref<10x10x32xf32, #tpu.memory_space<vmem>>, vector<8x8x32xf32>
    %44 = vector.shape_cast %43 : vector<8x8x32xf32> to vector<64x32xf32>
    %c2_39 = arith.constant 2 : index
    %c2_40 = arith.constant 2 : index
    %c0_41 = arith.constant 0 : index
    %45 = vector.load %arg15[%c2_39, %c2_40, %c0_41] : memref<10x10x32xf32, #tpu.memory_space<vmem>>, vector<8x8x32xf32>
    %46 = vector.shape_cast %45 : vector<8x8x32xf32> to vector<64x32xf32>
    %47 = tpu.concatenate %30, %32, %34, %36, %38, %40, %42, %44, %46 in 1 : vector<64x32xf32>, vector<64x32xf32>, vector<64x32xf32>, vector<64x32xf32>, vector<64x32xf32>, vector<64x32xf32>, vector<64x32xf32>, vector<64x32xf32>, vector<64x32xf32> -> vector<64x288xf32>
    %c0_42 = arith.constant 0 : index
    %c0_43 = arith.constant 0 : index
    %48 = vector.load %arg3[%c0_42, %c0_43] : memref<288x32xf32, #tpu.memory_space<vmem>>, vector<288x32xf32>
    %cst_44 = arith.constant dense<0.000000e+00> : vector<64x32xf32>
    %49 = tpu.matmul %47, %48, %cst_44 {dimension_numbers = #tpu.dot_dimension_numbers<[1], [0], [0], [1], [0, 0, 1, 1], [], []>} : vector<64x288xf32>, vector<288x32xf32>, vector<64x32xf32> -> vector<64x32xf32>
    %c0_45 = arith.constant 0 : index
    %c0_46 = arith.constant 0 : index
    %50 = vector.load %arg4[%c0_45, %c0_46] : memref<1x32xf32, #tpu.memory_space<vmem>>, vector<1x32xf32>
    %51 = vector.broadcast %50 : vector<1x32xf32> to vector<64x32xf32>
    %52 = arith.addf %49, %51 : vector<64x32xf32>
    %53 = vector.shape_cast %52 : vector<64x32xf32> to vector<8x8x32xf32>
    %cst_47 = arith.constant dense<0.000000e+00> : vector<8x8xf32>
    %54 = vector.multi_reduction <add>, %53, %cst_47 [2] : vector<8x8x32xf32> to vector<8x8xf32>
    %55 = vector.shape_cast %54 : vector<8x8xf32> to vector<8x8x1xf32>
    %cst_48 = arith.constant 3.200000e+01 : f32
    %56 = vector.broadcast %cst_48 : f32 to vector<8x8x1xf32>
    %57 = arith.divf %55, %56 : vector<8x8x1xf32>
    %58 = vector.broadcast %57 : vector<8x8x1xf32> to vector<8x8x32xf32>
    %59 = arith.subf %53, %58 : vector<8x8x32xf32>
    %60 = arith.mulf %59, %59 : vector<8x8x32xf32>
    %cst_49 = arith.constant dense<0.000000e+00> : vector<8x8xf32>
    %61 = vector.multi_reduction <add>, %60, %cst_49 [2] : vector<8x8x32xf32> to vector<8x8xf32>
    %62 = vector.shape_cast %61 : vector<8x8xf32> to vector<8x8x1xf32>
    %cst_50 = arith.constant 3.200000e+01 : f32
    %63 = vector.broadcast %cst_50 : f32 to vector<8x8x1xf32>
    %64 = arith.divf %62, %63 : vector<8x8x1xf32>
    %65 = vector.broadcast %57 : vector<8x8x1xf32> to vector<8x8x32xf32>
    %66 = arith.subf %53, %65 : vector<8x8x32xf32>
    %cst_51 = arith.constant 9.99999974E-6 : f32
    %67 = vector.broadcast %cst_51 : f32 to vector<8x8x1xf32>
    %68 = arith.addf %64, %67 : vector<8x8x1xf32>
    %69 = math.rsqrt %68 : vector<8x8x1xf32>
    %70 = vector.broadcast %69 : vector<8x8x1xf32> to vector<8x8x32xf32>
    %71 = arith.mulf %66, %70 : vector<8x8x32xf32>
    %c0_52 = arith.constant 0 : index
    %c0_53 = arith.constant 0 : index
    %72 = vector.load %arg5[%c0_52, %c0_53] : memref<1x32xf32, #tpu.memory_space<vmem>>, vector<1x32xf32>
    %73 = vector.shape_cast %72 : vector<1x32xf32> to vector<1x1x32xf32>
    %74 = vector.broadcast %73 : vector<1x1x32xf32> to vector<8x8x32xf32>
    %75 = arith.mulf %71, %74 : vector<8x8x32xf32>
    %cst_54 = arith.constant 0.000000e+00 : f32
    %76 = vector.broadcast %cst_54 : f32 to vector<8x8x32xf32>
    %77 = arith.maximumf %75, %76 : vector<8x8x32xf32>
    %c1_55 = arith.constant 1 : index
    %c1_56 = arith.constant 1 : index
    %c0_57 = arith.constant 0 : index
    %78 = vector.load %arg15[%c1_55, %c1_56, %c0_57] : memref<10x10x32xf32, #tpu.memory_space<vmem>>, vector<8x8x32xf32>
    tpu.vector_store %arg15[%c1_55, %c1_56, %c0_57], %77 {strides = array<i32>} : memref<10x10x32xf32, #tpu.memory_space<vmem>>, vector<8x8x32xf32>,
    %c0_58 = arith.constant 0 : index
    %c0_59 = arith.constant 0 : index
    %c0_60 = arith.constant 0 : index
    %79 = vector.load %arg15[%c0_58, %c0_59, %c0_60] : memref<10x10x32xf32, #tpu.memory_space<vmem>>, vector<8x8x32xf32>
    %80 = vector.shape_cast %79 : vector<8x8x32xf32> to vector<64x32xf32>
    %c0_61 = arith.constant 0 : index
    %c1_62 = arith.constant 1 : index
    %c0_63 = arith.constant 0 : index
    %81 = vector.load %arg15[%c0_61, %c1_62, %c0_63] : memref<10x10x32xf32, #tpu.memory_space<vmem>>, vector<8x8x32xf32>
    %82 = vector.shape_cast %81 : vector<8x8x32xf32> to vector<64x32xf32>
    %c0_64 = arith.constant 0 : index
    %c2_65 = arith.constant 2 : index
    %c0_66 = arith.constant 0 : index
    %83 = vector.load %arg15[%c0_64, %c2_65, %c0_66] : memref<10x10x32xf32, #tpu.memory_space<vmem>>, vector<8x8x32xf32>
    %84 = vector.shape_cast %83 : vector<8x8x32xf32> to vector<64x32xf32>
    %c1_67 = arith.constant 1 : index
    %c0_68 = arith.constant 0 : index
    %c0_69 = arith.constant 0 : index
    %85 = vector.load %arg15[%c1_67, %c0_68, %c0_69] : memref<10x10x32xf32, #tpu.memory_space<vmem>>, vector<8x8x32xf32>
    %86 = vector.shape_cast %85 : vector<8x8x32xf32> to vector<64x32xf32>
    %c1_70 = arith.constant 1 : index
    %c1_71 = arith.constant 1 : index
    %c0_72 = arith.constant 0 : index
    %87 = vector.load %arg15[%c1_70, %c1_71, %c0_72] : memref<10x10x32xf32, #tpu.memory_space<vmem>>, vector<8x8x32xf32>
    %88 = vector.shape_cast %87 : vector<8x8x32xf32> to vector<64x32xf32>
    %c1_73 = arith.constant 1 : index
    %c2_74 = arith.constant 2 : index
    %c0_75 = arith.constant 0 : index
    %89 = vector.load %arg15[%c1_73, %c2_74, %c0_75] : memref<10x10x32xf32, #tpu.memory_space<vmem>>, vector<8x8x32xf32>
    %90 = vector.shape_cast %89 : vector<8x8x32xf32> to vector<64x32xf32>
    %c2_76 = arith.constant 2 : index
    %c0_77 = arith.constant 0 : index
    %c0_78 = arith.constant 0 : index
    %91 = vector.load %arg15[%c2_76, %c0_77, %c0_78] : memref<10x10x32xf32, #tpu.memory_space<vmem>>, vector<8x8x32xf32>
    %92 = vector.shape_cast %91 : vector<8x8x32xf32> to vector<64x32xf32>
    %c2_79 = arith.constant 2 : index
    %c1_80 = arith.constant 1 : index
    %c0_81 = arith.constant 0 : index
    %93 = vector.load %arg15[%c2_79, %c1_80, %c0_81] : memref<10x10x32xf32, #tpu.memory_space<vmem>>, vector<8x8x32xf32>
    %94 = vector.shape_cast %93 : vector<8x8x32xf32> to vector<64x32xf32>
    %c2_82 = arith.constant 2 : index
    %c2_83 = arith.constant 2 : index
    %c0_84 = arith.constant 0 : index
    %95 = vector.load %arg15[%c2_82, %c2_83, %c0_84] : memref<10x10x32xf32, #tpu.memory_space<vmem>>, vector<8x8x32xf32>
    %96 = vector.shape_cast %95 : vector<8x8x32xf32> to vector<64x32xf32>
    %97 = tpu.concatenate %80, %82, %84, %86, %88, %90, %92, %94, %96 in 1 : vector<64x32xf32>, vector<64x32xf32>, vector<64x32xf32>, vector<64x32xf32>, vector<64x32xf32>, vector<64x32xf32>, vector<64x32xf32>, vector<64x32xf32>, vector<64x32xf32> -> vector<64x288xf32>
    %c0_85 = arith.constant 0 : index
    %c0_86 = arith.constant 0 : index
    %98 = vector.load %arg6[%c0_85, %c0_86] : memref<288x32xf32, #tpu.memory_space<vmem>>, vector<288x32xf32>
    %cst_87 = arith.constant dense<0.000000e+00> : vector<64x32xf32>
    %99 = tpu.matmul %97, %98, %cst_87 {dimension_numbers = #tpu.dot_dimension_numbers<[1], [0], [0], [1], [0, 0, 1, 1], [], []>} : vector<64x288xf32>, vector<288x32xf32>, vector<64x32xf32> -> vector<64x32xf32>
    %c0_88 = arith.constant 0 : index
    %c0_89 = arith.constant 0 : index
    %100 = vector.load %arg7[%c0_88, %c0_89] : memref<1x32xf32, #tpu.memory_space<vmem>>, vector<1x32xf32>
    %101 = vector.broadcast %100 : vector<1x32xf32> to vector<64x32xf32>
    %102 = arith.addf %99, %101 : vector<64x32xf32>
    %cst_90 = arith.constant dense<0.000000e+00> : vector<32xf32>
    %103 = vector.multi_reduction <add>, %102, %cst_90 [0] : vector<64x32xf32> to vector<32xf32>
    %104 = vector.shape_cast %103 : vector<32xf32> to vector<1x32xf32>
    %cst_91 = arith.constant 6.400000e+01 : f32
    %105 = vector.broadcast %cst_91 : f32 to vector<1x32xf32>
    %106 = arith.divf %104, %105 : vector<1x32xf32>
    %cst_92 = arith.constant dense<0xFF800000> : vector<32xf32>
    %107 = vector.multi_reduction <maximumf>, %102, %cst_92 [0] : vector<64x32xf32> to vector<32xf32>
    %108 = vector.shape_cast %107 : vector<32xf32> to vector<1x32xf32>
    %109 = tpu.concatenate %106, %108 in 0 : vector<1x32xf32>, vector<1x32xf32> -> vector<2x32xf32>
    %c0_93 = arith.constant 0 : index
    %c0_94 = arith.constant 0 : index
    %110 = vector.load %arg8[%c0_93, %c0_94] : memref<32x3xf32, #tpu.memory_space<vmem>>, vector<32x3xf32>
    %cst_95 = arith.constant dense<0.000000e+00> : vector<2x3xf32>
    %111 = tpu.matmul %109, %110, %cst_95 {dimension_numbers = #tpu.dot_dimension_numbers<[1], [0], [0], [1], [0, 0, 1, 1], [], []>} : vector<2x32xf32>, vector<32x3xf32>, vector<2x3xf32> -> vector<2x3xf32>
    %c0_96 = arith.constant 0 : index
    %c0_97 = arith.constant 0 : index
    %112 = vector.load %arg9[%c0_96, %c0_97] : memref<1x3xf32, #tpu.memory_space<vmem>>, vector<1x3xf32>
    %113 = vector.broadcast %112 : vector<1x3xf32> to vector<2x3xf32>
    %114 = arith.addf %111, %113 : vector<2x3xf32>
    %cst_98 = arith.constant 0.000000e+00 : f32
    %115 = vector.broadcast %cst_98 : f32 to vector<2x3xf32>
    %116 = arith.maximumf %114, %115 : vector<2x3xf32>
    %c0_99 = arith.constant 0 : index
    %c0_100 = arith.constant 0 : index
    %117 = vector.load %arg10[%c0_99, %c0_100] : memref<3x32xf32, #tpu.memory_space<vmem>>, vector<3x32xf32>
    %cst_101 = arith.constant dense<0.000000e+00> : vector<2x32xf32>
    %118 = tpu.matmul %116, %117, %cst_101 {dimension_numbers = #tpu.dot_dimension_numbers<[1], [0], [0], [1], [0, 0, 1, 1], [], []>} : vector<2x3xf32>, vector<3x32xf32>, vector<2x32xf32> -> vector<2x32xf32>
    %c0_102 = arith.constant 0 : index
    %c0_103 = arith.constant 0 : index
    %119 = vector.load %arg11[%c0_102, %c0_103] : memref<1x32xf32, #tpu.memory_space<vmem>>, vector<1x32xf32>
    %120 = vector.broadcast %119 : vector<1x32xf32> to vector<2x32xf32>
    %121 = arith.addf %118, %120 : vector<2x32xf32>
    %122 = vector.extract_strided_slice %121 {offsets = [0, 0], sizes = [1, 32], strides = [1, 1]} : vector<2x32xf32> to vector<1x32xf32>
    %123 = vector.extract_strided_slice %121 {offsets = [1, 0], sizes = [1, 32], strides = [1, 1]} : vector<2x32xf32> to vector<1x32xf32>
    %124 = arith.addf %122, %123 : vector<1x32xf32>
    %cst_104 = arith.constant 0.000000e+00 : f32
    %125 = vector.broadcast %cst_104 : f32 to vector<1x32xf32>
    %126 = arith.subf %125, %124 : vector<1x32xf32>
    %127 = math.exp %126 : vector<1x32xf32>
    %cst_105 = arith.constant 1.000000e+00 : f32
    %128 = vector.broadcast %cst_105 : f32 to vector<1x32xf32>
    %129 = arith.addf %128, %127 : vector<1x32xf32>
    %cst_106 = arith.constant 1.000000e+00 : f32
    %130 = vector.broadcast %cst_106 : f32 to vector<1x32xf32>
    %131 = arith.divf %130, %129 : vector<1x32xf32>
    %132 = vector.broadcast %131 : vector<1x32xf32> to vector<64x32xf32>
    %133 = arith.mulf %102, %132 : vector<64x32xf32>
    %cst_107 = arith.constant dense<0xFF800000> : vector<64xf32>
    %134 = vector.multi_reduction <maximumf>, %133, %cst_107 [1] : vector<64x32xf32> to vector<64xf32>
    %135 = vector.shape_cast %134 : vector<64xf32> to vector<64x1xf32>
    %cst_108 = arith.constant dense<0.000000e+00> : vector<64xf32>
    %136 = vector.multi_reduction <add>, %133, %cst_108 [1] : vector<64x32xf32> to vector<64xf32>
    %137 = vector.shape_cast %136 : vector<64xf32> to vector<64x1xf32>
    %cst_109 = arith.constant 3.200000e+01 : f32
    %138 = vector.broadcast %cst_109 : f32 to vector<64x1xf32>
    %139 = arith.divf %137, %138 : vector<64x1xf32>
    %140 = tpu.concatenate %135, %139 in 0 : vector<64x1xf32>, vector<64x1xf32> -> vector<128x1xf32>
    %c0_110 = arith.constant 0 : index
    %c0_111 = arith.constant 0 : index
    %141 = vector.load %arg12[%c0_110, %c0_111] : memref<64x128xf32, #tpu.memory_space<vmem>>, vector<64x128xf32>
    %cst_112 = arith.constant dense<0.000000e+00> : vector<64x1xf32>
    %142 = tpu.matmul %141, %140, %cst_112 {dimension_numbers = #tpu.dot_dimension_numbers<[1], [0], [0], [1], [0, 0, 1, 1], [], []>} : vector<64x128xf32>, vector<128x1xf32>, vector<64x1xf32> -> vector<64x1xf32>
    %c0_113 = arith.constant 0 : index
    %143 = memref.load %arg13[%c0_113] : memref<2xf32, #tpu.memory_space<smem>>
    %144 = vector.broadcast %143 : f32 to vector<64x1xf32>
    %145 = arith.mulf %142, %144 : vector<64x1xf32>
    %c1_114 = arith.constant 1 : index
    %146 = memref.load %arg13[%c1_114] : memref<2xf32, #tpu.memory_space<smem>>
    %147 = vector.broadcast %146 : f32 to vector<64x1xf32>
    %148 = arith.addf %145, %147 : vector<64x1xf32>
    %cst_115 = arith.constant 0.000000e+00 : f32
    %149 = vector.broadcast %cst_115 : f32 to vector<64x1xf32>
    %150 = arith.subf %149, %148 : vector<64x1xf32>
    %151 = math.exp %150 : vector<64x1xf32>
    %cst_116 = arith.constant 1.000000e+00 : f32
    %152 = vector.broadcast %cst_116 : f32 to vector<64x1xf32>
    %153 = arith.addf %152, %151 : vector<64x1xf32>
    %cst_117 = arith.constant 1.000000e+00 : f32
    %154 = vector.broadcast %cst_117 : f32 to vector<64x1xf32>
    %155 = arith.divf %154, %153 : vector<64x1xf32>
    %156 = vector.broadcast %155 : vector<64x1xf32> to vector<64x32xf32>
    %157 = arith.mulf %133, %156 : vector<64x32xf32>
    %158 = vector.shape_cast %3 : vector<8x8x32xf32> to vector<64x32xf32>
    %159 = arith.addf %157, %158 : vector<64x32xf32>
    %160 = vector.shape_cast %159 : vector<64x32xf32> to vector<8x8x32xf32>
    %c0_118 = arith.constant 0 : index
    %c0_119 = arith.constant 0 : index
    %c0_120 = arith.constant 0 : index
    %c0_121 = arith.constant 0 : index
    %161 = vector.load %arg14[%c0_118, %c0_119, %c0_120, %c0_121] : memref<1x8x8x32xf32, #tpu.memory_space<vmem>>, vector<1x8x8x32xf32>
    %162 = vector.shape_cast %161 : vector<1x8x8x32xf32> to vector<8x8x32xf32>
    %163 = vector.shape_cast %160 : vector<8x8x32xf32> to vector<1x8x8x32xf32>
    tpu.vector_store %arg14[%c0_118, %c0_119, %c0_120, %c0_121], %163 {strides = array<i32>} : memref<1x8x8x32xf32, #tpu.memory_space<vmem>>, vector<1x8x8x32xf32>,
    return
  }
  func.func @transform_0(%arg0: i32) -> (i32, i32, i32, i32) {
    %c0_i32 = arith.constant 0 : i32
    %c0_i32_0 = arith.constant 0 : i32
    %c0_i32_1 = arith.constant 0 : i32
    %c0_i32_2 = arith.constant 0 : i32
    return %arg0, %c0_i32, %c0_i32_0, %c0_i32_1 : i32, i32, i32, i32
  }
  func.func @transform_1(%arg0: i32) -> (i32, i32) {
    %c0_i32 = arith.constant 0 : i32
    %c0_i32_0 = arith.constant 0 : i32
    %c0_i32_1 = arith.constant 0 : i32
    return %c0_i32, %c0_i32_0 : i32, i32
  }
  func.func @transform_2(%arg0: i32) -> (i32, i32) {
    %c0_i32 = arith.constant 0 : i32
    %c0_i32_0 = arith.constant 0 : i32
    %c0_i32_1 = arith.constant 0 : i32
    return %c0_i32, %c0_i32_0 : i32, i32
  }
  func.func @transform_3(%arg0: i32) -> (i32, i32) {
    %c0_i32 = arith.constant 0 : i32
    %c0_i32_0 = arith.constant 0 : i32
    %c0_i32_1 = arith.constant 0 : i32
    return %c0_i32, %c0_i32_0 : i32, i32
  }
  func.func @transform_4(%arg0: i32) -> (i32, i32) {
    %c0_i32 = arith.constant 0 : i32
    %c0_i32_0 = arith.constant 0 : i32
    %c0_i32_1 = arith.constant 0 : i32
    return %c0_i32, %c0_i32_0 : i32, i32
  }
  func.func @transform_5(%arg0: i32) -> (i32, i32) {
    %c0_i32 = arith.constant 0 : i32
    %c0_i32_0 = arith.constant 0 : i32
    %c0_i32_1 = arith.constant 0 : i32
    return %c0_i32, %c0_i32_0 : i32, i32
  }
  func.func @transform_6(%arg0: i32) -> (i32, i32) {
    %c0_i32 = arith.constant 0 : i32
    %c0_i32_0 = arith.constant 0 : i32
    %c0_i32_1 = arith.constant 0 : i32
    return %c0_i32, %c0_i32_0 : i32, i32
  }
  func.func @transform_7(%arg0: i32) -> (i32, i32) {
    %c0_i32 = arith.constant 0 : i32
    %c0_i32_0 = arith.constant 0 : i32
    %c0_i32_1 = arith.constant 0 : i32
    return %c0_i32, %c0_i32_0 : i32, i32
  }
  func.func @transform_8(%arg0: i32) -> (i32, i32) {
    %c0_i32 = arith.constant 0 : i32
    %c0_i32_0 = arith.constant 0 : i32
    %c0_i32_1 = arith.constant 0 : i32
    return %c0_i32, %c0_i32_0 : i32, i32
  }
  func.func @transform_9(%arg0: i32) -> (i32, i32) {
    %c0_i32 = arith.constant 0 : i32
    %c0_i32_0 = arith.constant 0 : i32
    %c0_i32_1 = arith.constant 0 : i32
    return %c0_i32, %c0_i32_0 : i32, i32
  }
  func.func @transform_10(%arg0: i32) -> (i32, i32) {
    %c0_i32 = arith.constant 0 : i32
    %c0_i32_0 = arith.constant 0 : i32
    %c0_i32_1 = arith.constant 0 : i32
    return %c0_i32, %c0_i32_0 : i32, i32
  }
  func.func @transform_11(%arg0: i32) -> (i32, i32) {
    %c0_i32 = arith.constant 0 : i32
    %c0_i32_0 = arith.constant 0 : i32
    %c0_i32_1 = arith.constant 0 : i32
    return %c0_i32, %c0_i32_0 : i32, i32
  }
  func.func @transform_12(%arg0: i32) -> i32 {
    %c0_i32 = arith.constant 0 : i32
    %c0_i32_0 = arith.constant 0 : i32
    return %c0_i32 : i32
  }
  func.func @transform_13(%arg0: i32) -> (i32, i32, i32, i32) {
    %c0_i32 = arith.constant 0 : i32
    %c0_i32_0 = arith.constant 0 : i32
    %c0_i32_1 = arith.constant 0 : i32
    %c0_i32_2 = arith.constant 0 : i32
    return %arg0, %c0_i32, %c0_i32_0, %c0_i32_1 : i32, i32, i32, i32
  }
}

</mosaic_0001>

<bundles_post_ra>
// kernel: resnet_block_pallas.1
= control target key start
LH: loop header
LB: loop body
LE: loop exit
PB: predicated region body
PF: predicated region fallthrough
CT: control target
= control target key end

     0   :  { %s4643_s0 = inlined_call_operand.vmem [shape: f32[2,8,8,32], index: 0, kind: input, shape index: {}]   ;;  %s4644_s1 = inlined_call_operand.vmem [shape: f32[1,32], index: 1, kind: input, shape index: {}]   ;;  %s4645_s2 = inlined_call_operand.vmem [shape: f32[288,32], index: 2, kind: input, shape index: {}]   ;;  %s4646_s3 = inlined_call_operand.vmem [shape: f32[1,32], index: 3, kind: input, shape index: {}]   ;;  %s4647_s4 = inlined_call_operand.vmem [shape: f32[1,32], index: 4, kind: input, shape index: {}]   ;;  %s4648_s5 = inlined_call_operand.vmem [shape: f32[288,32], index: 5, kind: input, shape index: {}]   ;;  %s4649_s6 = inlined_call_operand.vmem [shape: f32[1,32], index: 6, kind: input, shape index: {}]   ;;  %s4650_s7 = inlined_call_operand.vmem [shape: f32[32,3], index: 7, kind: input, shape index: {}]   ;;  %s4651_s8 = inlined_call_operand.vmem [shape: f32[1,3], index: 8, kind: input, shape index: {}]   ;;  %s4652_s9 = inlined_call_operand.vmem [shape: f32[3,32], index: 9, kind: input, shape index: {}]   ;;  %s4653_s10 = inlined_call_operand.vmem [shape: f32[1,32], index: 10, kind: input, shape index: {}]   ;;  %s4654_s11 = inlined_call_operand.vmem [shape: f32[64,128], index: 11, kind: input, shape index: {}]   ;;  %s4655_s12 = inlined_call_operand.vmem [shape: f32[2], index: 12, kind: input, shape index: {}]   ;;  %s4656_s13 = inlined_call_operand.hbm [shape: f32[2,8,8,32], index: 13, kind: output, shape index: {}]  }
   0x1   :  { %4664 = sst [smem:[#allocation11_spill]] %s4643_s0 }
   0x2   :  { %4665 = sst [smem:[#allocation12_spill]] %s4655_s12 }
   0x3   :  { %18 = vsyncpa [#allocation5], 0 }
   0x4   :  { %19 = vsyncpa [#allocation4], 0 }
   0x5   :  { %21 = vsyncpa [#allocation4 + $0x1], 0  ;;  %s3532_s25 = smov 0   ;;  %s3534_s26 = smov 0  }
   0x6   :  { %s3536_s27 = smov 0   ;;  %s3538_s28 = smov 0  }
   0x7 LB: > { %4666 = sst [smem:[#allocation9_spill]] %s3445_s27  ;;  %s3553_s29 = sadd.s32 4294967295, %s3449_s28   ;;  %s3449_s28 = sphi %s3538_s28, %s4680_s28   ;;  %s3445_s27 = sphi %s3536_s27, %s4677_s27   ;;  %s3441_s26 = sphi %s3534_s26, %s4679_s26   ;;  %s3437_s25 = sphi %s3532_s25, %s4678_s25  }
   0x8   : > { %s2564_s30 = sadd.s32 4294967294, %s3449_s28   ;;  %s3557_s14 = sadd.s32 1, %s3449_s28  }
   0x9   : > { %s312_s15 = sadd.s32 1, %s3445_s27  ;;  %s309_s16 = ssub.s32 %s3449_s28, %s3557_s14 }
   0xa   : > { %p322_p0 = scmp.ne.s32.totalorder %s3445_s27, %s3441_s26  ;;  %p310_p1 = scmp.eq.s32.totalorder %s309_s16, 0 }
   0xb   : > { %p323_p2 = scmp.eq.s32.totalorder %s3553_s29, 1  ;;  %p328_p3 = scmp.ne.s32.totalorder %s3441_s26, %s3437_s25 }
   0xc   : > { %p329_p4 = scmp.eq.s32.totalorder %s2564_s30, 1  ;;  %p2565_p7 = scmp.ge.s32.totalorder %s3449_s28, 1 }
   0xd   : > { %s3568_s17 = scalar_select %p310_p1, %s3445_s27, %s312_s15  }
   0xe   : > { %p3570_p5 = por %p323_p2, %p322_p0  ;;  %p3574_p6 = por %p329_p4, %p328_p3 }
   0xf   : > { %4667 = sst [smem:[#allocation10_spill]] %s3568_s17  ;;  %p336_p8 = scmp.lt.s32.totalorder %s3449_s28, 3 }
  0x10   : > { %p3005_p9 = scmp.eq.s32.totalorder %s3553_s29, 0  ;;  %s4671_s12 = sld [smem:[#allocation12_spill]] }
  0x11   : > { %p3581_p10 = pnand %p2565_p7, %p336_p8 }
  0x13   : > { %p2997_p11 = pneg %p3581_p10 }
  0x15   : > { %p2998_p12 = pnand %p3005_p9, %p2997_p11 }
  0x16   : > { %s382_s23 = sshll.u32 %s4671_s12, 4  ;;  %s383_s23 = int_to_ptr.vmem [resolvable:$true] %s382_s23 }
  0x17   : > { %s3368_s24 = scalar_lea.vmem %s383_s23, 16  ;;  %p3370_p0 = pneg %p2998_p12 }
  0x18   : > { %p3369_p13 = scmp.ne.s32.totalorder %s383_s23, %s3368_s24  ;;  %p3376_p3 = scmp.lt.s32.totalorder %s383_s23, %s383_s23 }
  0x19   : > { %p3377_p4 = scmp.lt.s32.totalorder %s3368_s24, %s3368_s24 }
  0x1a   : > { %p3371_p1 = pnand %p3370_p0, %p3369_p13 }
  0x1b   : > { %p3378_p7 = por %p3377_p4, %p3376_p3 }
  0x1c   : > { %p3372_p2 = pneg %p3371_p1 }
  0x1e   : > { %p3379_p8 = pnand %p3378_p7, %p3372_p2 }
  0x20   : > { %3382 = shalt.err (!%p3379_p8)
}
  0x21   : > { %s3451_s30 = smov [#allocation3]   ;;  %403 = sbr.rel (%p3581_p10) target bundleno = 2534 (0x9e6), region = 72 }
  0x22   : > { %3000 = dma.vmem_to_smem (!%p2998_p12), %s383_s23, 16, %s3451_s30, [#allocation5]  }
  0x28   : > { %3428 = dma.done.wait (%p3005_p9), [#allocation5], 16  }
  0x29   : > { %3430 = vsyncadd (%p3005_p9), [#allocation5], 4294967280 }
  0x2a   : > { %409 = sfence }
  0x2b   : > { %p448_p11 = scmp.lt.s32.totalorder %s3553_s29, 1  ;;  %vm453_vm0 = vcmask 261120   ;;  %s4672_s0 = sld [smem:[#allocation11_spill]]  ;;  %vm455_vm1 = vcmask 254976   ;;  %v3452_v16 = vmov 0.0   ;;  %v967_v57 = vld [vmem:[%s4645_s2 + $0x100] sm:$0xff] }
  0x2c   : > { %457 = vst.msk [vmem:[#allocation2 + $0x10] sm:$0xff] %vm453_vm0, %v3452_v16  ;;  %454 = vst.msk [vmem:[#allocation2] sm:$0xff] %vm453_vm0, %v3452_v16  ;;  %v968_v58 = vld [vmem:[%s4645_s2 + $0x108] sm:$0xff]  ;;  %v969_v60 = vld [vmem:[%s4645_s2 + $0x110] sm:$0xff]  ;;  %s4662_s20 = smov 32   ;;  %s4660_s24 = smov 64  }
  0x2d   : > { %s449_s15 = scalar_select %p448_p11, %s3553_s29, 1  ;;  %458 = vst.msk [vmem:[#allocation2 + $0x18] sm:$0x3] %vm455_vm1, %v3452_v16  ;;  %456 = vst.msk [vmem:[#allocation2 + $0x8] sm:$0x3] %vm455_vm1, %v3452_v16  ;;  %v2905_v59 = vpack.c.bf16 %v968_v58, %v967_v57  ;;  %v970_v61 = vld [vmem:[%s4645_s2 + $0x118] sm:$0xff] }
  0x2e   : > { %459 = vst.msk [vmem:[#allocation2 + $0x20] sm:$0xff] %vm453_vm0, %v3452_v16  ;;  %461 = vst.msk [vmem:[#allocation2 + $0x30] sm:$0xff] %vm453_vm0, %v3452_v16  ;;  %v2909_v62 = vpack.c.bf16 %v970_v61, %v969_v60  ;;  %v951_v63 = vld [vmem:[%s4645_s2 + $0x80] sm:$0xff]  ;;  %s4658_s30 = smov 96   ;;  %vm893_vm2 = vcmask 523264   ;;  %vm902_vm3 = vcmask 785408  }
  0x2f   : > { %s2604_s16 = sshll.u32 %s449_s15, 6  ;;  %460 = vst.msk [vmem:[#allocation2 + $0x28] sm:$0x3] %vm455_vm1, %v3452_v16  ;;  %462 = vst.msk [vmem:[#allocation2 + $0x38] sm:$0x3] %vm455_vm1, %v3452_v16  ;;  %2906 = vmatprep.subr.bf16.mxu1 %v2905_v59  ;;  %s4673_s15 = smov 32  }
  0x30   : > { %463 = vst.msk [vmem:[#allocation2 + $0x40] sm:$0xff] %vm453_vm0, %v3452_v16  ;;  %465 = vst.msk [vmem:[#allocation2 + $0x50] sm:$0xff] %vm453_vm0, %v3452_v16  ;;  %2908 = vmatpush3.bf16.msra.mxu1 %v2905_v59  ;;  %v3784_v58 = vld [vmem:[%s4644_s1] ss:$0 sm:$0xff]  ;;  %s4675_s21 = smov 96   ;;  %vm3457_vm4 = vmmov 0  }
  0x31   : > { %s3603_s23 = scalar_lea.vmem %s4672_s0, %s2604_s16  ;;  %464 = vst.msk [vmem:[#allocation2 + $0x48] sm:$0x3] %vm455_vm1, %v3452_v16  ;;  %466 = vst.msk [vmem:[#allocation2 + $0x58] sm:$0x3] %vm455_vm1, %v3452_v16  ;;  %2910 = vmatprep.subr.bf16.mxu1 %v2909_v62  ;;  %s4674_s16 = smov 64   ;;  %vm1980_vm5 = vcmask 1040384  }
  0x32   : > { %v475_v0 = vld [vmem:[%s3603_s23] sm:$0xff]  ;;  %v477_v1 = vld [vmem:[%s3603_s23 + $0x10] sm:$0xff]  ;;  %v476_v2 = vld [vmem:[%s3603_s23 + $0x8] sm:$0xff]  ;;  %467 = vst.msk [vmem:[#allocation2 + $0x60] sm:$0xff] %vm453_vm0, %v3452_v16  ;;  %vm2079_vm6 = vcmask 1042432   ;;  %vm2075_vm7 = vcmask 23552  }
  0x33   : > { %v483_v3 = vsel %vm453_vm0, %v475_v0, 0.0  ;;  %v489_v4 = vsel %vm453_vm0, %v477_v1, 0.0  ;;  %v478_v5 = vld [vmem:[%s3603_s23 + $0x18] sm:$0xff]  ;;  %v486_v6 = vsel %vm453_vm0, %v476_v2, 0.0  ;;  %v479_v8 = vld [vmem:[%s3603_s23 + $0x20] sm:$0xff]  ;;  %v480_v9 = vld [vmem:[%s3603_s23 + $0x28] sm:$0xff] }
  0x34   : > { %484 = vadd.xlane.f32.xlu0 %v483_v3  ;;  %490 = vadd.xlane.f32.xlu1 %v489_v4  ;;  %v492_v7 = vsel %vm453_vm0, %v478_v5, 0.0  ;;  %v495_v10 = vsel %vm453_vm0, %v479_v8, 0.0  ;;  %v498_v11 = vsel %vm453_vm0, %v480_v9, 0.0  ;;  %v3618_v12 = vld [vmem:[%s3603_s23 + $0x30] sm:$0xff]  ;;  %v3621_v13 = vld [vmem:[%s3603_s23 + $0x38] sm:$0xff]  ;;  %469 = vst.msk [vmem:[#allocation2 + $0x70] sm:$0xff] %vm453_vm0, %v3452_v16 }
  0x35   : > { %v501_v14 = vsel %vm453_vm0, %v3618_v12, 0.0  ;;  %v504_v15 = vsel %vm453_vm0, %v3621_v13, 0.0  ;;  %468 = vst.msk [vmem:[#allocation2 + $0x68] sm:$0x3] %vm455_vm1, %v3452_v16  ;;  %470 = vst.msk [vmem:[#allocation2 + $0x78] sm:$0x3] %vm455_vm1, %v3452_v16  ;;  %2912 = vmatpush3.bf16.msra.mxu1 %v2909_v62 }
  0x36   : > { %471 = vst.msk [vmem:[#allocation2 + $0x80] sm:$0xff] %vm453_vm0, %v3452_v16  ;;  %473 = vst.msk [vmem:[#allocation2 + $0x90] sm:$0xff] %vm453_vm0, %v3452_v16  ;;  %v936_v3 = vld [vmem:[%s4645_s2 + $0x8] sm:$0xff]  ;;  %v953_v4 = vld [vmem:[%s4645_s2 + $0x90] sm:$0xff]  ;;  %s2344_s17 = sld [smem:[#allocation3]]  ;;  %s2605_s27 = sshll.u32 %s3553_s29, 10 }
  0x37   : > { %472 = vst.msk [vmem:[#allocation2 + $0x88] sm:$0x3] %vm455_vm1, %v3452_v16  ;;  %474 = vst.msk [vmem:[#allocation2 + $0x98] sm:$0x3] %vm455_vm1, %v3452_v16 }
  0x38   : > { %487 = vadd.xlane.f32.xlu0 %v486_v6  ;;  %493 = vadd.xlane.f32.xlu1 %v492_v7 }
  0x3c   : > { %496 = vadd.xlane.f32.xlu0 %v495_v10  ;;  %499 = vadd.xlane.f32.xlu1 %v498_v11  ;;  %v955_v10 = vld [vmem:[%s4645_s2 + $0xa0] sm:$0xff]  ;;  %v956_v11 = vld [vmem:[%s4645_s2 + $0xa8] sm:$0xff] }
  0x40   : > { %502 = vadd.xlane.f32.xlu0 %v501_v14  ;;  %505 = vadd.xlane.f32.xlu1 %v504_v15  ;;  %v939_v14 = vld [vmem:[%s4645_s2 + $0x20] sm:$0xff]  ;;  %v940_v15 = vld [vmem:[%s4645_s2 + $0x28] sm:$0xff] }
  0xc1   : > { %v485_v17 = vpop.xlane.xlu0 %484  ;;  %v491_v18 = vpop.xlane.xlu1 %490 }
  0xc2   : > { %v508_v19 = vmul.f32 0.03125, %v485_v17  ;;  %v510_v20 = vmul.f32 0.03125, %v491_v18  ;;  %v957_v17 = vld [vmem:[%s4645_s2 + $0xb0] sm:$0xff]  ;;  %v958_v18 = vld [vmem:[%s4645_s2 + $0xb8] sm:$0xff] }
  0xc4   : > { %v3667_v21 = vsub.f32 %v475_v0, %v508_v19  ;;  %v3669_v22 = vsub.f32 %v477_v1, %v510_v20  ;;  %v952_v0 = vld [vmem:[%s4645_s2 + $0x88] sm:$0xff]  ;;  %v935_v1 = vld [vmem:[%s4645_s2] sm:$0xff]  ;;  %v2883_v19 = vpack.c.bf16 %v940_v15, %v939_v14  ;;  %v2885_v20 = vpack.c.bf16 %v958_v18, %v957_v17 }
  0xc5   : > { %v488_v23 = vpop.xlane.xlu0 %487  ;;  %v494_v24 = vpop.xlane.xlu1 %493  ;;  %v2875_v6 = vpack.c.bf16 %v936_v3, %v935_v1  ;;  %v962_v1 = vld [vmem:[%s4645_s2 + $0xd8] sm:$0xff] }
  0xc6   : > { %v509_v25 = vmul.f32 0.03125, %v488_v23  ;;  %v511_v26 = vmul.f32 0.03125, %v494_v24  ;;  %v524_v27 = vmul.f32 %v3667_v21, %v3667_v21  ;;  %v526_v28 = vmul.f32 %v3669_v22, %v3669_v22  ;;  %v941_v23 = vld [vmem:[%s4645_s2 + $0x30] sm:$0xff]  ;;  %v942_v24 = vld [vmem:[%s4645_s2 + $0x38] sm:$0xff] }
  0xc8   : > { %v3675_v29 = vsub.f32 %v476_v2, %v509_v25  ;;  %v3677_v30 = vsub.f32 %v478_v5, %v511_v26  ;;  %v532_v31 = vsel %vm453_vm0, %v524_v27, 0.0  ;;  %v538_v34 = vsel %vm453_vm0, %v526_v28, 0.0  ;;  %v954_v5 = vld [vmem:[%s4645_s2 + $0x98] sm:$0xff]  ;;  %v959_v25 = vld [vmem:[%s4645_s2 + $0xc0] sm:$0xff]  ;;  %v960_v26 = vld [vmem:[%s4645_s2 + $0xc8] sm:$0xff] }
  0xc9   : > { %533 = vadd.xlane.f32.xlu0 %v532_v31  ;;  %v497_v32 = vpop.xlane.xlu0 %496  ;;  %v500_v33 = vpop.xlane.xlu1 %499  ;;  %v2873_v2 = vpack.c.bf16 %v952_v0, %v951_v63  ;;  %v2877_v7 = vpack.c.bf16 %v954_v5, %v953_v4  ;;  %v2887_v27 = vpack.c.bf16 %v942_v24, %v941_v23  ;;  %v2889_v28 = vpack.c.bf16 %v960_v26, %v959_v25  ;;  %v943_v31 = vld [vmem:[%s4645_s2 + $0x40] sm:$0xff]  ;;  %v961_v0 = vld [vmem:[%s4645_s2 + $0xd0] sm:$0xff] }
  0xca   : > { %v512_v35 = vmul.f32 0.03125, %v497_v32  ;;  %v513_v36 = vmul.f32 0.03125, %v500_v33  ;;  %v525_v37 = vmul.f32 %v3675_v29, %v3675_v29  ;;  %v527_v38 = vmul.f32 %v3677_v30, %v3677_v30  ;;  %v944_v32 = vld [vmem:[%s4645_s2 + $0x48] sm:$0xff]  ;;  %v945_v4 = vld [vmem:[%s4645_s2 + $0x50] sm:$0xff] }
  0xcb   : > { %2874 = vmatprep.subr.bf16.mxu0 %v2873_v2  ;;  %v2891_v33 = vpack.c.bf16 %v944_v32, %v943_v31  ;;  %v2893_v3 = vpack.c.bf16 %v962_v1, %v961_v0 }
  0xcc   : > { %v3685_v39 = vsub.f32 %v479_v8, %v512_v35  ;;  %v3687_v40 = vsub.f32 %v480_v9, %v513_v36  ;;  %v535_v41 = vsel %vm453_vm0, %v525_v37, 0.0  ;;  %v541_v44 = vsel %vm453_vm0, %v527_v38, 0.0  ;;  %v937_v8 = vld [vmem:[%s4645_s2 + $0x10] sm:$0xff]  ;;  %v938_v9 = vld [vmem:[%s4645_s2 + $0x18] sm:$0xff]  ;;  %2876 = vmatpush3.bf16.msra.mxu0 %v2875_v6 }
  0xcd   : > { %539 = vadd.xlane.f32.xlu0 %v538_v34  ;;  %536 = vadd.xlane.f32.xlu1 %v535_v41  ;;  %v503_v42 = vpop.xlane.xlu0 %502  ;;  %v506_v43 = vpop.xlane.xlu1 %505 }
  0xce   : > { %v514_v45 = vmul.f32 0.03125, %v503_v42  ;;  %v515_v46 = vmul.f32 0.03125, %v506_v43  ;;  %v528_v47 = vmul.f32 %v3685_v39, %v3685_v39  ;;  %v529_v48 = vmul.f32 %v3687_v40, %v3687_v40  ;;  %2878 = vmatprep.subr.bf16.mxu0 %v2877_v7 }
  0xd0   : > { %v3696_v49 = vsub.f32 %v3618_v12, %v514_v45  ;;  %v3699_v50 = vsub.f32 %v3621_v13, %v515_v46  ;;  %v544_v51 = vsel %vm453_vm0, %v528_v47, 0.0  ;;  %v547_v52 = vsel %vm453_vm0, %v529_v48, 0.0 }
  0xd1   : > { %542 = vadd.xlane.f32.xlu1 %v541_v44  ;;  %545 = vadd.xlane.f32.xlu0 %v544_v51  ;;  %v2879_v12 = vpack.c.bf16 %v938_v9, %v937_v8  ;;  %v2881_v13 = vpack.c.bf16 %v956_v11, %v955_v10 }
  0xd2   : > { %v530_v53 = vmul.f32 %v3696_v49, %v3696_v49  ;;  %v531_v54 = vmul.f32 %v3699_v50, %v3699_v50 }
  0xd3   : > { %2880 = vmatpush3.bf16.msra.mxu0 %v2879_v12  ;;  %v963_v12 = vld [vmem:[%s4645_s2 + $0xe0] sm:$0xff] }
  0xd4   : > { %v550_v55 = vsel %vm453_vm0, %v530_v53, 0.0  ;;  %v553_v56 = vsel %vm453_vm0, %v531_v54, 0.0  ;;  %2882 = vmatprep.subr.bf16.mxu0 %v2881_v13  ;;  %v964_v13 = vld [vmem:[%s4645_s2 + $0xe8] sm:$0xff] }
  0xd5   : > { %548 = vadd.xlane.f32.xlu1 %v547_v52  ;;  %551 = vadd.xlane.f32.xlu0 %v550_v55  ;;  %v2897_v15 = vpack.c.bf16 %v964_v13, %v963_v12 }
  0xd7   : > { %2884 = vmatpush3.bf16.msra.mxu0 %v2883_v19 }
  0xd8   : > { %2886 = vmatprep.subr.bf16.mxu0 %v2885_v20 }
  0xd9   : > { %554 = vadd.xlane.f32.xlu1 %v553_v56 }
  0xdb   : > { %2888 = vmatpush3.bf16.msra.mxu0 %v2887_v27  ;;  %v965_v27 = vld [vmem:[%s4645_s2 + $0xf0] sm:$0xff] }
  0xdc   : > { %2890 = vmatprep.subr.bf16.mxu0 %v2889_v28  ;;  %v966_v28 = vld [vmem:[%s4645_s2 + $0xf8] sm:$0xff] }
  0xdd   : > { %v2901_v32 = vpack.c.bf16 %v966_v28, %v965_v27 }
  0xdf   : > { %2892 = vmatpush3.bf16.msra.mxu0 %v2891_v33 }
  0xe0   : > { %2894 = vmatprep.subr.bf16.mxu0 %v2893_v3 }
 0x156   : > { %v534_v34 = vpop.xlane.xlu0 %533 }
 0x157   : > { %v556_v35 = vmul.f32 0.03125, %v534_v34 }
 0x159   : > { %v564_v36 = vadd.f32 1e-05, %v556_v35  ;;  %v3835_v35 = vld [vmem:[#allocation2 + $0x1] sm:$0xff] }
 0x15a   : > { %v537_v37 = vpop.xlane.xlu1 %536  ;;  %v540_v38 = vpop.xlane.xlu0 %539 }
 0x15b   : > { %3292 = vrsqrt.f32 %v564_v36  ;;  %v557_v41 = vmul.f32 0.03125, %v537_v37  ;;  %v558_v42 = vmul.f32 0.03125, %v540_v38 }
 0x15d   : > { %v565_v43 = vadd.f32 1e-05, %v557_v41  ;;  %v566_v44 = vadd.f32 1e-05, %v558_v42 }
 0x15e   : > { %v543_v45 = vpop.xlane.xlu1 %542  ;;  %v546_v46 = vpop.xlane.xlu0 %545 }
 0x15f   : > { %3294 = vrsqrt.f32 %v565_v43  ;;  %v559_v47 = vmul.f32 0.03125, %v543_v45  ;;  %v560_v48 = vmul.f32 0.03125, %v546_v46 }
 0x160   : > { %3296 = vrsqrt.f32 %v566_v44 }
 0x161   : > { %v567_v51 = vadd.f32 1e-05, %v559_v47  ;;  %v568_v52 = vadd.f32 1e-05, %v560_v48 }
 0x162   : > { %v549_v53 = vpop.xlane.xlu1 %548  ;;  %v552_v54 = vpop.xlane.xlu0 %551 }
 0x163   : > { %3298 = vrsqrt.f32 %v567_v51  ;;  %v561_v55 = vmul.f32 0.03125, %v549_v53  ;;  %v562_v56 = vmul.f32 0.03125, %v552_v54  ;;  %v3844_v51 = vld [vmem:[#allocation2 + $0x2] sm:$0xff] }
 0x164   : > { %3300 = vrsqrt.f32 %v568_v52 }
 0x165   : > { %v3293_v57 = vpop.eup %3292  ;;  %v569_v59 = vadd.f32 1e-05, %v561_v55  ;;  %v570_v60 = vadd.f32 1e-05, %v562_v56 }
 0x166   : > { %v580_v61 = vmul.f32 %v3293_v57, %v3667_v21  ;;  %v555_v62 = vpop.xlane.xlu1 %554  ;;  %v946_v21 = vld [vmem:[%s4645_s2 + $0x58] sm:$0xff] }
 0x167   : > { %3302 = vrsqrt.f32 %v569_v59  ;;  %v563_v63 = vmul.f32 0.03125, %v555_v62  ;;  %v2895_v7 = vpack.c.bf16 %v946_v21, %v945_v4 }
 0x168   : > { %v595_v2 = vmul.f32 %v3784_v58, %v580_v61  ;;  %3304 = vrsqrt.f32 %v570_v60 }
 0x169   : > { %v3295_v5 = vpop.eup %3294  ;;  %v571_v6 = vadd.f32 1e-05, %v563_v63  ;;  %2896 = vmatpush3.bf16.msra.mxu0 %v2895_v7 }
 0x16a   : > { %v3297_v8 = vpop.eup %3296  ;;  %v603_v9 = vmax.f32 %v595_v2, 0.0  ;;  %v581_v10 = vmul.f32 %v3295_v5, %v3675_v29  ;;  %v947_v29 = vld [vmem:[%s4645_s2 + $0x60] sm:$0xff]  ;;  %2898 = vmatprep.subr.bf16.mxu0 %v2897_v15 }
 0x16b   : > { %v582_v11 = vmul.f32 %v3297_v8, %v3669_v22  ;;  %3306 = vrsqrt.f32 %v571_v6  ;;  %v948_v22 = vld [vmem:[%s4645_s2 + $0x68] sm:$0xff] }
 0x16c   : > { %612 = vst.msk [vmem:[#allocation2 + $0x11] sm:$0xff] %vm453_vm0, %v603_v9  ;;  %v596_v14 = vmul.f32 %v3784_v58, %v581_v10  ;;  %v2899_v19 = vpack.c.bf16 %v948_v22, %v947_v29 }
 0x16d   : > { %v3299_v17 = vpop.eup %3298  ;;  %v597_v18 = vmul.f32 %v3784_v58, %v582_v11 }
 0x16e   : > { %v3301_v20 = vpop.eup %3300  ;;  %v604_v23 = vmax.f32 %v596_v14, 0.0  ;;  %v583_v24 = vmul.f32 %v3299_v17, %v3677_v30  ;;  %2900 = vmatpush3.bf16.msra.mxu0 %v2899_v19  ;;  %v949_v30 = vld [vmem:[%s4645_s2 + $0x70] sm:$0xff] }
 0x16f   : > { %v605_v25 = vmax.f32 %v597_v18, 0.0  ;;  %v584_v26 = vmul.f32 %v3301_v20, %v3685_v39  ;;  %v950_v39 = vld [vmem:[%s4645_s2 + $0x78] sm:$0xff]  ;;  %2902 = vmatprep.subr.bf16.mxu0 %v2901_v32  ;;  %v3931_v32 = vld [vmem:[#allocation2 + $0x90] sm:$0xff] }
 0x170   : > { %613 = vst.msk [vmem:[#allocation2 + $0x21] sm:$0xff] %vm453_vm0, %v604_v23  ;;  %v598_v31 = vmul.f32 %v3784_v58, %v583_v24  ;;  %v2903_v36 = vpack.c.bf16 %v950_v39, %v949_v30 }
 0x171   : > { %v3303_v33 = vpop.eup %3302  ;;  %614 = vst.msk [vmem:[#allocation2 + $0x31] sm:$0xff] %vm453_vm0, %v605_v25  ;;  %v599_v34 = vmul.f32 %v3784_v58, %v584_v26 }
 0x172   : > { %v3305_v37 = vpop.eup %3304  ;;  %v606_v38 = vmax.f32 %v598_v31, 0.0  ;;  %v585_v41 = vmul.f32 %v3303_v33, %v3687_v40  ;;  %2904 = vmatpush3.bf16.msra.mxu0 %v2903_v36 }
 0x173   : > { %v607_v42 = vmax.f32 %v599_v34, 0.0  ;;  %v586_v43 = vmul.f32 %v3305_v37, %v3696_v49  ;;  %v660_v44 = vld [vmem:[#allocation2 + $0x12] sm:$0xff] }
 0x174   : > { %615 = vst.msk [vmem:[#allocation2 + $0x41] sm:$0xff] %vm453_vm0, %v606_v38  ;;  %v600_v45 = vmul.f32 %v3784_v58, %v585_v41  ;;  %v3050_v46 = vpack.i.bf16 %v3835_v35, %v660_v44  ;;  %v3864_v62 = vld [vmem:[#allocation2 + $0x10] sm:$0xff] }
 0x175   : > { %v3307_v47 = vpop.eup %3306  ;;  %616 = vst.msk [vmem:[#allocation2 + $0x51] sm:$0xff] %vm453_vm0, %v607_v42  ;;  %v601_v48 = vmul.f32 %v3784_v58, %v586_v43  ;;  %v3876_v4 = vld [vmem:[#allocation2 + $0x11] sm:$0xff] }
 0x176   : > { %v608_v40 = vmax.f32 %v600_v45, 0.0  ;;  %v587_v52 = vmul.f32 %v3307_v47, %v3699_v50  ;;  %3051 = vrot.lane.b32.xlu0 %v3050_v46, %s4662_s20  ;;  %v692_v34 = vld [vmem:[#allocation2 + $0x92] sm:$0xff] }
 0x177   : > { %v609_v49 = vmax.f32 %v601_v48, 0.0  ;;  %v685_v53 = vld [vmem:[#allocation2 + $0x22] sm:$0xff]  ;;  %v3942_v38 = vld [vmem:[#allocation2 + $0x91] sm:$0xff] }
 0x178   : > { %v3848_v54 = vld [vmem:[#allocation2 + $0x20] sm:$0xff]  ;;  %617 = vst.msk [vmem:[#allocation2 + $0x61] sm:$0xff] %vm453_vm0, %v608_v40  ;;  %v602_v55 = vmul.f32 %v3784_v58, %v587_v52  ;;  %2781 = vmatprep.mubr.msk.f32.mxu1 %vm453_vm0, %v685_v53  ;;  %v686_v56 = vld [vmem:[#allocation2 + $0x32] sm:$0xff]  ;;  %v3065_v5 = vpack.i.bf16 %v3876_v4, %v685_v53 }
 0x179   : > { %v3055_v57 = vpack.i.bf16 %v3844_v51, %v3848_v54  ;;  %v3855_v59 = vld [vmem:[#allocation2 + $0x30] sm:$0xff]  ;;  %618 = vst.msk [vmem:[#allocation2 + $0x71] sm:$0xff] %vm453_vm0, %v609_v49  ;;  %2782 = vmatmul.mubr.msk.f32.vlgmr.msra.gmra.mrb[0].mxu1 %vm453_vm0, %v686_v56  ;;  %v3860_v60 = vld [vmem:[#allocation2 + $0x21] sm:$0xff] }
 0x17a   : > { %v3070_v50 = vpack.i.bf16 %v660_v44, %v3855_v59  ;;  %v610_v61 = vmax.f32 %v602_v55, 0.0  ;;  %v3060_v0 = vpack.i.bf16 %v3864_v62, %v3860_v60  ;;  %v3080_v1 = vpack.i.bf16 %v3860_v60, %v686_v56  ;;  %v3883_v7 = vld [vmem:[#allocation2 + $0x31] sm:$0xff]  ;;  %v3947_v40 = vld [vmem:[#allocation2] sm:$0xff] }
 0x17b   : > { %3056 = vrot.lane.b32.xlu1 %v3055_v57, %s4660_s24  ;;  %v687_v58 = vld [vmem:[#allocation2 + $0x42] sm:$0xff]  ;;  %v3075_v10 = vpack.i.bf16 %v3848_v54, %v3883_v7 }
 0x17c   : > { %3071 = vrot.lane.b32.xlu0 %v3070_v50, %s4660_s24  ;;  %619 = vst.msk [vmem:[#allocation2 + $0x81] sm:$0xff] %vm453_vm0, %v610_v61  ;;  %2784 = vmatprep.mubr.msk.f32.mxu1 %vm453_vm0, %v687_v58  ;;  %v688_v63 = vld [vmem:[#allocation2 + $0x52] sm:$0xff]  ;;  %v3873_v2 = vld [vmem:[#allocation2 + $0x41] sm:$0xff]  ;;  %v3095_v29 = vpack.i.bf16 %v3883_v7, %v687_v58 }
 0x17d   : > { %2785 = vmatmul.mubr.msk.f32.gmra.mrb[2].mxu1 %vm453_vm0, %v688_v63  ;;  %v3090_v6 = vpack.i.bf16 %v3855_v59, %v3873_v2  ;;  %v3886_v8 = vld [vmem:[#allocation2 + $0x50] sm:$0xff]  ;;  %v3893_v12 = vld [vmem:[#allocation2 + $0x40] sm:$0xff]  ;;  %v3110_v14 = vpack.i.bf16 %v3873_v2, %v688_v63 }
 0x17e   : > { %v3100_v11 = vpack.i.bf16 %v686_v56, %v3886_v8  ;;  %v3085_v13 = vpack.i.bf16 %v685_v53, %v3893_v12  ;;  %v3906_v17 = vld [vmem:[#allocation2 + $0x51] sm:$0xff] }
 0x17f   : > { %3061 = vrot.lane.b32.xlu1 %v3060_v0, %s4658_s30  ;;  %v689_v3 = vld [vmem:[#allocation2 + $0x62] sm:$0xff]  ;;  %v3105_v19 = vpack.i.bf16 %v3893_v12, %v3906_v17 }
 0x180   : > { %3081 = vrot.lane.b32.xlu0 %v3080_v1, %s4662_s20  ;;  %2787 = vmatprep.mubr.msk.f32.mxu1 %vm453_vm0, %v689_v3  ;;  %v690_v21 = vld [vmem:[#allocation2 + $0x72] sm:$0xff]  ;;  %v3900_v15 = vld [vmem:[#allocation2 + $0x61] sm:$0xff]  ;;  %v3125_v27 = vpack.i.bf16 %v3906_v17, %v689_v3 }
 0x181   : > { %2788 = vmatmul.mubr.msk.f32.gmra.mrb[4].mxu1 %vm453_vm0, %v690_v21  ;;  %v3120_v22 = vpack.i.bf16 %v3886_v8, %v3900_v15  ;;  %v3909_v18 = vld [vmem:[#allocation2 + $0x70] sm:$0xff]  ;;  %v3915_v23 = vld [vmem:[#allocation2 + $0x60] sm:$0xff]  ;;  %v3140_v25 = vpack.i.bf16 %v3900_v15, %v690_v21  ;;  %v3160_v39 = vpack.i.bf16 %v690_v21, %v3931_v32 }
 0x182   : > { %v3130_v20 = vpack.i.bf16 %v688_v63, %v3909_v18  ;;  %v3115_v24 = vpack.i.bf16 %v687_v58, %v3915_v23  ;;  %v3928_v31 = vld [vmem:[#allocation2 + $0x71] sm:$0xff] }
 0x183   : > { %3066 = vrot.lane.b32.xlu1 %v3065_v5, %s4662_s20  ;;  %v691_v9 = vld [vmem:[#allocation2 + $0x82] sm:$0xff]  ;;  %v3135_v30 = vpack.i.bf16 %v3915_v23, %v3928_v31 }
 0x184   : > { %3091 = vrot.lane.b32.xlu0 %v3090_v6, %s4658_s30  ;;  %2790 = vmatprep.mubr.msk.f32.mxu1 %vm453_vm0, %v691_v9  ;;  %v3922_v26 = vld [vmem:[#allocation2 + $0x81] sm:$0xff]  ;;  %v3155_v37 = vpack.i.bf16 %v3928_v31, %v691_v9 }
 0x185   : > { %v3150_v28 = vpack.i.bf16 %v3909_v18, %v3922_v26  ;;  %v675_v33 = vld [vmem:[#allocation2 + $0x80] sm:$0xff]  ;;  %2791 = vmatmul.mubr.msk.f32.gmra.mrb[6].mxu1 %vm453_vm0, %v692_v34 }
 0x186   : > { %v3145_v36 = vpack.i.bf16 %v689_v3, %v675_v33  ;;  %v3165_v41 = vpack.i.bf16 %v675_v33, %v3942_v38 }
 0x187   : > { %3076 = vrot.lane.b32.xlu1 %v3075_v10, %s4658_s30 }
 0x188   : > { %3101 = vrot.lane.b32.xlu0 %v3100_v11, %s4660_s24 }
 0x18b   : > { %3086 = vrot.lane.b32.xlu1 %v3085_v13, %s4660_s24 }
 0x18c   : > { %3111 = vrot.lane.b32.xlu0 %v3110_v14, %s4662_s20 }
 0x18f   : > { %3096 = vrot.lane.b32.xlu1 %v3095_v29, %s4662_s20 }
 0x190   : > { %3121 = vrot.lane.b32.xlu0 %v3120_v22, %s4658_s30 }
 0x193   : > { %3106 = vrot.lane.b32.xlu1 %v3105_v19, %s4658_s30 }
 0x194   : > { %3131 = vrot.lane.b32.xlu0 %v3130_v20, %s4660_s24 }
 0x197   : > { %3116 = vrot.lane.b32.xlu1 %v3115_v24, %s4660_s24 }
 0x198   : > { %3141 = vrot.lane.b32.xlu0 %v3140_v25, %s4662_s20 }
 0x19b   : > { %3126 = vrot.lane.b32.xlu1 %v3125_v27, %s4662_s20 }
 0x19c   : > { %3151 = vrot.lane.b32.xlu0 %v3150_v28, %s4658_s30 }
 0x19f   : > { %3136 = vrot.lane.b32.xlu1 %v3135_v30, %s4658_s30 }
 0x1a0   : > { %3161 = vrot.lane.b32.xlu0 %v3160_v39, %s4660_s24 }
 0x1a3   : > { %3146 = vrot.lane.b32.xlu1 %v3145_v36, %s4660_s24 }
 0x1a7   : > { %3156 = vrot.lane.b32.xlu1 %v3155_v37, %s4662_s20 }
 0x1ab   : > { %3166 = vrot.lane.b32.xlu1 %v3165_v41, %s4658_s30  ;;  %s4593_s30 = scalar_lea.hbm %s4656_s13, %s2605_s27 }
 0x1e8   : > { %v3052_v42 = vpop.permute.xlu0 %3051 }
 0x1e9   : > { %v3054_v44 = vunpack.i.h.bf16 %v3052_v42  ;;  %v3053_v45 = vunpack.i.l.bf16 %v3052_v42 }
 0x1eb   : > { %v911_v56 = vsel %vm453_vm0, %v3876_v4, %v3053_v45  ;;  %v885_v57 = vsel %vm453_vm0, %v3947_v40, %v3054_v44 }
 0x1ed   : > { %v3057_v43 = vpop.permute.xlu1 %3056 }
 0x1ee   : > { %v3072_v46 = vpop.permute.xlu0 %3071  ;;  %v3059_v47 = vunpack.i.h.bf16 %v3057_v43  ;;  %v3058_v48 = vunpack.i.l.bf16 %v3057_v43 }
 0x1ef   : > { %v3074_v6 = vunpack.i.h.bf16 %v3072_v46  ;;  %v3073_v9 = vunpack.i.l.bf16 %v3072_v46 }
 0x1f0   : > { %v919_v50 = vsel %vm893_vm2, %v911_v56, %v3058_v48  ;;  %v894_v61 = vsel %vm893_vm2, %v885_v57, %v3059_v47 }
 0x1f1   : > { %v3062_v52 = vpop.permute.xlu1 %3061 }
 0x1f2   : > { %v3064_v49 = vunpack.i.h.bf16 %v3062_v52  ;;  %v3063_v53 = vunpack.i.l.bf16 %v3062_v52  ;;  %v3082_v55 = vpop.permute.xlu0 %3081 }
 0x1f3   : > { %v3084_v29 = vunpack.i.h.bf16 %v3082_v55  ;;  %v3083_v22 = vunpack.i.l.bf16 %v3082_v55 }
 0x1f4   : > { %v927_v58 = vsel %vm902_vm3, %v919_v50, %v3063_v53  ;;  %v903_v63 = vsel %vm902_vm3, %v894_v61, %v3064_v49 }
 0x1f5   : > { %v3067_v0 = vpop.permute.xlu1 %3066  ;;  %1066 = vmatprep.mubr.f32.mxu0 %v927_v58  ;;  %v913_v33 = vsel %vm453_vm0, %v3883_v7, %v3083_v22  ;;  %v887_v34 = vsel %vm453_vm0, %v3848_v54, %v3084_v29 }
 0x1f6   : > { %v3069_v1 = vunpack.i.h.bf16 %v3067_v0  ;;  %v3068_v3 = vunpack.i.l.bf16 %v3067_v0  ;;  %v3092_v21 = vpop.permute.xlu0 %3091  ;;  %1067 = vmatmul.mubr.f32.vlgmr.msra.gmra.mrb[0].mxu0 %v903_v63 }
 0x1f7   : > { %v3094_v30 = vunpack.i.h.bf16 %v3092_v21  ;;  %v3093_v39 = vunpack.i.l.bf16 %v3092_v21 }
 0x1f8   : > { %v912_v4 = vsel %vm453_vm0, %v3860_v60, %v3068_v3  ;;  %v886_v5 = vsel %vm453_vm0, %v3864_v62, %v3069_v1 }
 0x1f9   : > { %v3077_v10 = vpop.permute.xlu1 %3076  ;;  %v920_v19 = vsel %vm893_vm2, %v912_v4, %v3073_v9  ;;  %v895_v20 = vsel %vm893_vm2, %v886_v5, %v3074_v6 }
 0x1fa   : > { %v3079_v11 = vunpack.i.h.bf16 %v3077_v10  ;;  %v3078_v13 = vunpack.i.l.bf16 %v3077_v10  ;;  %v3102_v14 = vpop.permute.xlu0 %3101 }
 0x1fb   : > { %v3104_v47 = vunpack.i.h.bf16 %v3102_v14  ;;  %v3103_v48 = vunpack.i.l.bf16 %v3102_v14 }
 0x1fc   : > { %v928_v24 = vsel %vm902_vm3, %v920_v19, %v3078_v13  ;;  %v904_v25 = vsel %vm902_vm3, %v895_v20, %v3079_v11 }
 0x1fd   : > { %v3087_v60 = vpop.permute.xlu1 %3086  ;;  %1071 = vmatprep.mubr.f32.mxu0 %v928_v24 }
 0x1fe   : > { %v3089_v27 = vunpack.i.h.bf16 %v3087_v60  ;;  %v3088_v62 = vunpack.i.l.bf16 %v3087_v60  ;;  %v3112_v28 = vpop.permute.xlu0 %3111  ;;  %1072 = vmatmul.mubr.f32.gmra.mrb[2].mxu0 %v904_v25 }
 0x1ff   : > { %v3114_v55 = vunpack.i.h.bf16 %v3112_v28  ;;  %v3113_v56 = vunpack.i.l.bf16 %v3112_v28 }
 0x200   : > { %v921_v36 = vsel %vm893_vm2, %v913_v33, %v3088_v62  ;;  %v896_v37 = vsel %vm893_vm2, %v887_v34, %v3089_v27 }
 0x201   : > { %v3097_v41 = vpop.permute.xlu1 %3096  ;;  %v929_v42 = vsel %vm902_vm3, %v921_v36, %v3093_v39  ;;  %v905_v43 = vsel %vm902_vm3, %v896_v37, %v3094_v30  ;;  %v915_v21 = vsel %vm453_vm0, %v3906_v17, %v3113_v56  ;;  %v889_v4 = vsel %vm453_vm0, %v3893_v12, %v3114_v55 }
 0x202   : > { %v3099_v44 = vunpack.i.h.bf16 %v3097_v41  ;;  %v3098_v45 = vunpack.i.l.bf16 %v3097_v41  ;;  %v3122_v46 = vpop.permute.xlu0 %3121  ;;  %1076 = vmatprep.mubr.f32.mxu0 %v929_v42 }
 0x203   : > { %1077 = vmatmul.mubr.f32.gmra.mrb[4].mxu0 %v905_v43  ;;  %v3124_v1 = vunpack.i.h.bf16 %v3122_v46  ;;  %v3123_v3 = vunpack.i.l.bf16 %v3122_v46 }
 0x204   : > { %v914_v7 = vsel %vm453_vm0, %v3873_v2, %v3098_v45  ;;  %v888_v54 = vsel %vm453_vm0, %v3855_v59, %v3099_v44 }
 0x205   : > { %v3107_v52 = vpop.permute.xlu1 %3106  ;;  %v922_v57 = vsel %vm893_vm2, %v914_v7, %v3103_v48  ;;  %v897_v50 = vsel %vm893_vm2, %v888_v54, %v3104_v47 }
 0x206   : > { %v3109_v49 = vunpack.i.h.bf16 %v3107_v52  ;;  %v3108_v53 = vunpack.i.l.bf16 %v3107_v52  ;;  %v3132_v61 = vpop.permute.xlu0 %3131 }
 0x207   : > { %v3134_v22 = vunpack.i.h.bf16 %v3132_v61  ;;  %v3133_v19 = vunpack.i.l.bf16 %v3132_v61 }
 0x208   : > { %v930_v58 = vsel %vm902_vm3, %v922_v57, %v3108_v53  ;;  %v906_v63 = vsel %vm902_vm3, %v897_v50, %v3109_v49 }
 0x209   : > { %v3117_v2 = vpop.permute.xlu1 %3116  ;;  %1081 = vmatprep.mubr.f32.mxu0 %v930_v58 }
 0x20a   : > { %v3119_v0 = vunpack.i.h.bf16 %v3117_v2  ;;  %v3118_v59 = vunpack.i.l.bf16 %v3117_v2  ;;  %1082 = vmatmul.mubr.f32.gmra.mrb[6].mxu0 %v906_v63  ;;  %v3142_v13 = vpop.permute.xlu0 %3141 }
 0x20b   : > { %v3144_v60 = vunpack.i.h.bf16 %v3142_v13  ;;  %v3143_v27 = vunpack.i.l.bf16 %v3142_v13 }
 0x20c   : > { %v923_v5 = vsel %vm893_vm2, %v915_v21, %v3118_v59  ;;  %v898_v6 = vsel %vm893_vm2, %v889_v4, %v3119_v0  ;;  %v2574_v4 = vld [vmem:[%s4646_s3] ss:$0 sm:$0xff] }
 0x20d   : > { %v3127_v9 = vpop.permute.xlu1 %3126  ;;  %v931_v10 = vsel %vm902_vm3, %v923_v5, %v3123_v3  ;;  %v907_v11 = vsel %vm902_vm3, %v898_v6, %v3124_v1  ;;  %v917_v41 = vsel %vm453_vm0, %v3928_v31, %v3143_v27  ;;  %v891_v42 = vsel %vm453_vm0, %v3915_v23, %v3144_v60 }
 0x20e   : > { %v3129_v14 = vunpack.i.h.bf16 %v3127_v9  ;;  %v3128_v29 = vunpack.i.l.bf16 %v3127_v9  ;;  %1086 = vmatprep.mubr.f32.mxu0 %v931_v10  ;;  %v3152_v30 = vpop.permute.xlu0 %3151 }
 0x20f   : > { %1087 = vmatmul.mubr.f32.gmra.mrb[8].mxu0 %v907_v11  ;;  %v3154_v36 = vunpack.i.h.bf16 %v3152_v30  ;;  %v3153_v37 = vunpack.i.l.bf16 %v3152_v30 }
 0x210   : > { %v916_v17 = vsel %vm453_vm0, %v3900_v15, %v3128_v29  ;;  %v890_v12 = vsel %vm453_vm0, %v3886_v8, %v3129_v14 }
 0x211   : > { %v3137_v20 = vpop.permute.xlu1 %3136  ;;  %v924_v62 = vsel %vm893_vm2, %v916_v17, %v3133_v19  ;;  %v899_v28 = vsel %vm893_vm2, %v890_v12, %v3134_v22 }
 0x212   : > { %v3139_v24 = vunpack.i.h.bf16 %v3137_v20  ;;  %v3138_v25 = vunpack.i.l.bf16 %v3137_v20  ;;  %v3162_v54 = vpop.permute.xlu0 %3161 }
 0x213   : > { %v3164_v52 = vunpack.i.h.bf16 %v3162_v54  ;;  %v3163_v49 = vunpack.i.l.bf16 %v3162_v54 }
 0x214   : > { %v932_v39 = vsel %vm902_vm3, %v924_v62, %v3138_v25  ;;  %v908_v33 = vsel %vm902_vm3, %v899_v28, %v3139_v24 }
 0x215   : > { %v3147_v15 = vpop.permute.xlu1 %3146  ;;  %1091 = vmatprep.mubr.f32.mxu0 %v932_v39 }
 0x216   : > { %v3149_v34 = vunpack.i.h.bf16 %v3147_v15  ;;  %v3148_v8 = vunpack.i.l.bf16 %v3147_v15  ;;  %1092 = vmatmul.mubr.f32.gmra.mrb[10].mxu0 %v908_v33 }
 0x218   : > { %v925_v43 = vsel %vm893_vm2, %v917_v41, %v3148_v8  ;;  %v900_v44 = vsel %vm893_vm2, %v891_v42, %v3149_v34 }
 0x219   : > { %v3157_v45 = vpop.permute.xlu1 %3156  ;;  %v933_v46 = vsel %vm902_vm3, %v925_v43, %v3153_v37  ;;  %v909_v7 = vsel %vm902_vm3, %v900_v44, %v3154_v36 }
 0x21a   : > { %v3159_v47 = vunpack.i.h.bf16 %v3157_v45  ;;  %v3158_v48 = vunpack.i.l.bf16 %v3157_v45  ;;  %1096 = vmatprep.mubr.f32.mxu0 %v933_v46 }
 0x21b   : > { %1097 = vmatmul.mubr.f32.gmra.mrb[12].mxu0 %v909_v7 }
 0x21c   : > { %v918_v31 = vsel %vm453_vm0, %v3922_v26, %v3158_v48  ;;  %v892_v23 = vsel %vm453_vm0, %v3909_v18, %v3159_v47 }
 0x21d   : > { %v3167_v53 = vpop.permute.xlu1 %3166  ;;  %v926_v57 = vsel %vm893_vm2, %v918_v31, %v3163_v49  ;;  %v901_v50 = vsel %vm893_vm2, %v892_v23, %v3164_v52 }
 0x21e   : > { %v3169_v55 = vunpack.i.h.bf16 %v3167_v53  ;;  %v3168_v56 = vunpack.i.l.bf16 %v3167_v53 }
 0x220   : > { %v934_v61 = vsel %vm902_vm3, %v926_v57, %v3168_v56  ;;  %v910_v58 = vsel %vm902_vm3, %v901_v50, %v3169_v55 }
 0x221   : > { %1101 = vmatprep.mubr.f32.mxu0 %v934_v61 }
 0x222   : > { %1102 = vmatmul.mubr.f32.gmra.mrb[14].mxu0 %v910_v58 }
 0x24c   : > { %v2783_v63 = vpop.f32.mrb[0].mxu1 }
 0x24d   : > { %v1173_v26 = vpop.f32.mrb[1].mxu1 }
 0x250   : > { %v2786_v2 = vpop.f32.mrb[2].mxu1 }
 0x251   : > { %v1183_v0 = vpop.f32.mrb[3].mxu1 }
 0x254   : > { %v2789_v18 = vpop.f32.mrb[4].mxu1 }
 0x255   : > { %v1193_v59 = vpop.f32.mrb[5].mxu1 }
 0x258   : > { %v2792_v1 = vpop.f32.mrb[6].mxu1 }
 0x259   : > { %v1203_v3 = vpop.f32.mrb[7].mxu1 }
 0x2c9   : > { %v2638_v21 = vpop.f32.mrb[0].mxu0 }
 0x2ca   : > { %v2639_v5 = vpop.f32.mrb[1].mxu0 }
 0x2cb   : > { %v2640_v6 = vadd.f32 %v2639_v5, %v2638_v21 }
 0x2cd   : > { %v1069_v9 = vadd.f32 %v2640_v6, %v2574_v4 }
 0x2cf   : > { %v1174_v10 = vadd.f32 %v1173_v26, %v1069_v9 }
 0x2d1   : > { %v2641_v11 = vpop.f32.mrb[2].mxu0  ;;  %v1212_v13 = vsel %vm453_vm0, %v1174_v10, 0.0 }
 0x2d2   : > { %v2642_v14 = vpop.f32.mrb[3].mxu0  ;;  %1213 = vadd.xlane.f32.xlu0 %v1212_v13 }
 0x2d3   : > { %v2643_v29 = vadd.f32 %v2642_v14, %v2641_v11 }
 0x2d5   : > { %v1074_v17 = vadd.f32 %v2643_v29, %v2574_v4 }
 0x2d6   : > { %v2644_v12 = vpop.f32.mrb[4].mxu0 }
 0x2d7   : > { %v2645_v22 = vpop.f32.mrb[5].mxu0  ;;  %v1179_v19 = vadd.f32 %v2783_v63, %v1074_v17 }
 0x2d8   : > { %v2646_v20 = vadd.f32 %v2645_v22, %v2644_v12 }
 0x2d9   : > { %v1215_v24 = vsel %vm453_vm0, %v1179_v19, 0.0 }
 0x2da   : > { %v1079_v25 = vadd.f32 %v2646_v20, %v2574_v4  ;;  %1216 = vadd.xlane.f32.xlu1 %v1215_v24 }
 0x2dc   : > { %v1184_v60 = vadd.f32 %v1183_v0, %v1079_v25 }
 0x2dd   : > { %v2647_v27 = vpop.f32.mrb[6].mxu0 }
 0x2de   : > { %v2648_v62 = vpop.f32.mrb[7].mxu0  ;;  %v1218_v28 = vsel %vm453_vm0, %v1184_v60, 0.0 }
 0x2df   : > { %v2649_v30 = vadd.f32 %v2648_v62, %v2647_v27  ;;  %1219 = vadd.xlane.f32.xlu0 %v1218_v28 }
 0x2e1   : > { %v1084_v39 = vadd.f32 %v2649_v30, %v2574_v4 }
 0x2e2   : > { %v2650_v33 = vpop.f32.mrb[8].mxu0 }
 0x2e3   : > { %v2651_v15 = vpop.f32.mrb[9].mxu0  ;;  %v1189_v34 = vadd.f32 %v2786_v2, %v1084_v39 }
 0x2e4   : > { %v2652_v8 = vadd.f32 %v2651_v15, %v2650_v33 }
 0x2e5   : > { %v1221_v36 = vsel %vm453_vm0, %v1189_v34, 0.0 }
 0x2e6   : > { %v1089_v37 = vadd.f32 %v2652_v8, %v2574_v4  ;;  %1222 = vadd.xlane.f32.xlu0 %v1221_v36 }
 0x2e8   : > { %v1194_v41 = vadd.f32 %v1193_v59, %v1089_v37 }
 0x2e9   : > { %v2653_v42 = vpop.f32.mrb[10].mxu0 }
 0x2ea   : > { %v2654_v43 = vpop.f32.mrb[11].mxu0  ;;  %v1224_v44 = vsel %vm453_vm0, %v1194_v41, 0.0 }
 0x2eb   : > { %v2655_v45 = vadd.f32 %v2654_v43, %v2653_v42  ;;  %1225 = vadd.xlane.f32.xlu0 %v1224_v44  ;;  %v1675_v43 = vld [vmem:[%s4648_s5 + $0x80] sm:$0xff]  ;;  %v1676_v44 = vld [vmem:[%s4648_s5 + $0x88] sm:$0xff] }
 0x2ed   : > { %v1094_v46 = vadd.f32 %v2655_v45, %v2574_v4  ;;  %v1659_v45 = vld [vmem:[%s4648_s5] sm:$0xff] }
 0x2ee   : > { %v2656_v7 = vpop.f32.mrb[12].mxu0 }
 0x2ef   : > { %v2657_v54 = vpop.f32.mrb[13].mxu0  ;;  %v1199_v47 = vadd.f32 %v2789_v18, %v1094_v46  ;;  %v2913_v46 = vpack.c.bf16 %v1676_v44, %v1675_v43 }
 0x2f0   : > { %v2658_v48 = vadd.f32 %v2657_v54, %v2656_v7  ;;  %v1660_v7 = vld [vmem:[%s4648_s5 + $0x8] sm:$0xff]  ;;  %v1677_v54 = vld [vmem:[%s4648_s5 + $0x90] sm:$0xff] }
 0x2f1   : > { %v1227_v31 = vsel %vm453_vm0, %v1199_v47, 0.0  ;;  %2914 = vmatprep.subr.bf16.mxu1 %v2913_v46 }
 0x2f2   : > { %1228 = vadd.xlane.f32.xlu1 %v1227_v31  ;;  %v1099_v23 = vadd.f32 %v2658_v48, %v2574_v4  ;;  %v2915_v48 = vpack.c.bf16 %v1660_v7, %v1659_v45 }
 0x2f4   : > { %v1204_v52 = vadd.f32 %v1203_v3, %v1099_v23  ;;  %v1661_v23 = vld [vmem:[%s4648_s5 + $0x10] sm:$0xff]  ;;  %2916 = vmatpush3.bf16.msra.mxu1 %v2915_v48 }
 0x2f5   : > { %v2659_v49 = vpop.f32.mrb[14].mxu0 }
 0x2f6   : > { %v2660_v53 = vpop.f32.mrb[15].mxu0  ;;  %v1230_v55 = vsel %vm453_vm0, %v1204_v52, 0.0 }
 0x2f7   : > { %v2661_v56 = vadd.f32 %v2660_v53, %v2659_v49  ;;  %1231 = vadd.xlane.f32.xlu0 %v1230_v55  ;;  %v1679_v49 = vld [vmem:[%s4648_s5 + $0xa0] sm:$0xff]  ;;  %v1680_v53 = vld [vmem:[%s4648_s5 + $0xa8] sm:$0xff] }
 0x2f9   : > { %v1104_v57 = vadd.f32 %v2661_v56, %v2574_v4  ;;  %v2921_v56 = vpack.c.bf16 %v1680_v53, %v1679_v49 }
 0x2fb   : > { %v1209_v50 = vadd.f32 %v2792_v1, %v1104_v57  ;;  %v1663_v57 = vld [vmem:[%s4648_s5 + $0x20] sm:$0xff] }
 0x2fd   : > { %v1233_v61 = vsel %vm453_vm0, %v1209_v50, 0.0 }
 0x2fe   : > { %1234 = vadd.xlane.f32.xlu1 %v1233_v61  ;;  %v1681_v61 = vld [vmem:[%s4648_s5 + $0xb0] sm:$0xff] }
 0x35f   : > { %v1214_v58 = vpop.xlane.xlu0 %1213 }
 0x360   : > { %v1236_v63 = vmul.f32 0.03125, %v1214_v58  ;;  %v1682_v58 = vld [vmem:[%s4648_s5 + $0xb8] sm:$0xff] }
 0x362   : > { %v4024_v26 = vsub.f32 %v1174_v10, %v1236_v63 }
 0x364   : > { %v1252_v2 = vmul.f32 %v4024_v26, %v4024_v26 }
 0x366   : > { %v1260_v0 = vsel %vm453_vm0, %v1252_v2, 0.0  ;;  %v2925_v2 = vpack.c.bf16 %v1682_v58, %v1681_v61  ;;  %v1689_v58 = vld [vmem:[%s4648_s5 + $0xf0] sm:$0xff] }
 0x367   : > { %v1217_v18 = vpop.xlane.xlu1 %1216  ;;  %1261 = vadd.xlane.f32.xlu0 %v1260_v0  ;;  %v1665_v0 = vld [vmem:[%s4648_s5 + $0x30] sm:$0xff] }
 0x368   : > { %v1237_v59 = vmul.f32 0.03125, %v1217_v18  ;;  %v1666_v18 = vld [vmem:[%s4648_s5 + $0x38] sm:$0xff] }
 0x36a   : > { %v4029_v3 = vsub.f32 %v1179_v19, %v1237_v59  ;;  %v2927_v59 = vpack.c.bf16 %v1666_v18, %v1665_v0  ;;  %v1674_v18 = vld [vmem:[%s4648_s5 + $0x78] sm:$0xff] }
 0x36c   : > { %v1220_v21 = vpop.xlane.xlu0 %1219  ;;  %v1253_v1 = vmul.f32 %v4029_v3, %v4029_v3 }
 0x36d   : > { %v1238_v4 = vmul.f32 0.03125, %v1220_v21 }
 0x36e   : > { %v1263_v5 = vsel %vm453_vm0, %v1253_v1, 0.0 }
 0x36f   : > { %v4034_v6 = vsub.f32 %v1184_v60, %v1238_v4  ;;  %1264 = vadd.xlane.f32.xlu1 %v1263_v5 }
 0x371   : > { %v1254_v9 = vmul.f32 %v4034_v6, %v4034_v6 }
 0x373   : > { %v1223_v10 = vpop.xlane.xlu0 %1222  ;;  %v1266_v11 = vsel %vm453_vm0, %v1254_v9, 0.0 }
 0x374   : > { %v1239_v13 = vmul.f32 0.03125, %v1223_v10  ;;  %1267 = vadd.xlane.f32.xlu0 %v1266_v11 }
 0x376   : > { %v4039_v14 = vsub.f32 %v1189_v34, %v1239_v13 }
 0x378   : > { %v1226_v29 = vpop.xlane.xlu0 %1225  ;;  %v1255_v17 = vmul.f32 %v4039_v14, %v4039_v14 }
 0x379   : > { %v1240_v12 = vmul.f32 0.03125, %v1226_v29 }
 0x37a   : > { %v1269_v22 = vsel %vm453_vm0, %v1255_v17, 0.0  ;;  %v4115_v17 = vld [vmem:[%s4647_s4] ss:$0 sm:$0xff] }
 0x37b   : > { %v4044_v19 = vsub.f32 %v1194_v41, %v1240_v12  ;;  %1270 = vadd.xlane.f32.xlu1 %v1269_v22 }
 0x37d   : > { %v1256_v20 = vmul.f32 %v4044_v19, %v4044_v19 }
 0x37f   : > { %v1229_v24 = vpop.xlane.xlu1 %1228  ;;  %v1272_v25 = vsel %vm453_vm0, %v1256_v20, 0.0  ;;  %v1683_v20 = vld [vmem:[%s4648_s5 + $0xc0] sm:$0xff] }
 0x380   : > { %v1241_v60 = vmul.f32 0.03125, %v1229_v24  ;;  %1273 = vadd.xlane.f32.xlu0 %v1272_v25  ;;  %v1684_v24 = vld [vmem:[%s4648_s5 + $0xc8] sm:$0xff] }
 0x382   : > { %v4049_v27 = vsub.f32 %v1199_v47, %v1241_v60  ;;  %v1678_v47 = vld [vmem:[%s4648_s5 + $0x98] sm:$0xff]  ;;  %v2929_v60 = vpack.c.bf16 %v1684_v24, %v1683_v20 }
 0x383   : > { %v2917_v31 = vpack.c.bf16 %v1678_v47, %v1677_v54  ;;  %v1687_v54 = vld [vmem:[%s4648_s5 + $0xe0] sm:$0xff]  ;;  %v1688_v47 = vld [vmem:[%s4648_s5 + $0xe8] sm:$0xff] }
 0x384   : > { %v1232_v62 = vpop.xlane.xlu0 %1231  ;;  %v1257_v28 = vmul.f32 %v4049_v27, %v4049_v27 }
 0x385   : > { %v1242_v30 = vmul.f32 0.03125, %v1232_v62  ;;  %2918 = vmatprep.subr.bf16.mxu1 %v2917_v31  ;;  %v1667_v62 = vld [vmem:[%s4648_s5 + $0x40] sm:$0xff] }
 0x386   : > { %v1275_v39 = vsel %vm453_vm0, %v1257_v28, 0.0 }
 0x387   : > { %v4054_v33 = vsub.f32 %v1204_v52, %v1242_v30  ;;  %1276 = vadd.xlane.f32.xlu1 %v1275_v39  ;;  %v1662_v52 = vld [vmem:[%s4648_s5 + $0x18] sm:$0xff] }
 0x388   : > { %v2919_v55 = vpack.c.bf16 %v1662_v52, %v1661_v23  ;;  %v2937_v23 = vpack.c.bf16 %v1688_v47, %v1687_v54  ;;  %v1672_v52 = vld [vmem:[%s4648_s5 + $0x68] sm:$0xff] }
 0x389   : > { %v1258_v15 = vmul.f32 %v4054_v33, %v4054_v33 }
 0x38a   : > { %2920 = vmatpush3.bf16.msra.mxu1 %v2919_v55 }
 0x38b   : > { %v1235_v34 = vpop.xlane.xlu1 %1234  ;;  %v1278_v8 = vsel %vm453_vm0, %v1258_v15, 0.0  ;;  %2922 = vmatprep.subr.bf16.mxu1 %v2921_v56 }
 0x38c   : > { %v1243_v36 = vmul.f32 0.03125, %v1235_v34  ;;  %1279 = vadd.xlane.f32.xlu0 %v1278_v8  ;;  %v1685_v34 = vld [vmem:[%s4648_s5 + $0xd0] sm:$0xff]  ;;  %v1686_v8 = vld [vmem:[%s4648_s5 + $0xd8] sm:$0xff] }
 0x38e   : > { %v4059_v37 = vsub.f32 %v1209_v50, %v1243_v36  ;;  %v1664_v50 = vld [vmem:[%s4648_s5 + $0x28] sm:$0xff]  ;;  %v1669_v36 = vld [vmem:[%s4648_s5 + $0x50] sm:$0xff] }
 0x38f   : > { %v2923_v63 = vpack.c.bf16 %v1664_v50, %v1663_v57 }
 0x390   : > { %v1259_v41 = vmul.f32 %v4059_v37, %v4059_v37 }
 0x391   : > { %2924 = vmatpush3.bf16.msra.mxu1 %v2923_v63  ;;  %v1690_v63 = vld [vmem:[%s4648_s5 + $0xf8] sm:$0xff] }
 0x392   : > { %v1281_v42 = vsel %vm453_vm0, %v1259_v41, 0.0  ;;  %2926 = vmatprep.subr.bf16.mxu1 %v2925_v2  ;;  %v2933_v41 = vpack.c.bf16 %v1686_v8, %v1685_v34  ;;  %v1673_v2 = vld [vmem:[%s4648_s5 + $0x70] sm:$0xff]  ;;  %v2941_v0 = vpack.c.bf16 %v1690_v63, %v1689_v58 }
 0x393   : > { %1282 = vadd.xlane.f32.xlu1 %v1281_v42  ;;  %v1670_v42 = vld [vmem:[%s4648_s5 + $0x58] sm:$0xff] }
 0x394   : > { %v2935_v45 = vpack.c.bf16 %v1670_v42, %v1669_v36 }
 0x395   : > { %2928 = vmatpush3.bf16.msra.mxu1 %v2927_v59  ;;  %v2943_v59 = vpack.c.bf16 %v1674_v18, %v1673_v2 }
 0x396   : > { %2930 = vmatprep.subr.bf16.mxu1 %v2929_v60 }
 0x3f4   : > { %v1262_v21 = vpop.xlane.xlu0 %1261 }
 0x3f5   : > { %v1284_v1 = vmul.f32 0.03125, %v1262_v21 }
 0x3f7   : > { %v1292_v4 = vadd.f32 1e-05, %v1284_v1 }
 0x3f9   : > { %3308 = vrsqrt.f32 %v1292_v4 }
 0x3fc   : > { %v1265_v5 = vpop.xlane.xlu1 %1264 }
 0x3fd   : > { %v1285_v9 = vmul.f32 0.03125, %v1265_v5 }
 0x3ff   : > { %v1293_v10 = vadd.f32 1e-05, %v1285_v9 }
 0x401   : > { %3310 = vrsqrt.f32 %v1293_v10  ;;  %v1268_v11 = vpop.xlane.xlu0 %1267 }
 0x402   : > { %v1286_v13 = vmul.f32 0.03125, %v1268_v11 }
 0x403   : > { %v3309_v29 = vpop.eup %3308 }
 0x404   : > { %v1308_v12 = vmul.f32 %v3309_v29, %v4024_v26  ;;  %v1294_v22 = vadd.f32 1e-05, %v1286_v13  ;;  %v1668_v26 = vld [vmem:[%s4648_s5 + $0x48] sm:$0xff] }
 0x405   : > { %v2931_v28 = vpack.c.bf16 %v1668_v26, %v1667_v62 }
 0x406   : > { %v1323_v25 = vmul.f32 %v4115_v17, %v1308_v12  ;;  %3312 = vrsqrt.f32 %v1294_v22 }
 0x407   : > { %2932 = vmatpush3.bf16.msra.mxu1 %v2931_v28 }
 0x408   : > { %v1331_v30 = vmax.f32 %v1323_v25, 0.0  ;;  %v1271_v39 = vpop.xlane.xlu1 %1270  ;;  %2934 = vmatprep.subr.bf16.mxu1 %v2933_v41 }
 0x409   : > { %v1287_v15 = vmul.f32 0.03125, %v1271_v39 }
 0x40a   : > { %1339 = vst.msk [vmem:[#allocation2 + $0x11] sm:$0xff] %vm453_vm0, %v1331_v30 }
 0x40b   : > { %v3311_v43 = vpop.eup %3310  ;;  %v1295_v44 = vadd.f32 1e-05, %v1287_v15  ;;  %2936 = vmatpush3.bf16.msra.mxu1 %v2935_v45 }
 0x40c   : > { %v1309_v46 = vmul.f32 %v3311_v43, %v4029_v3  ;;  %v1671_v3 = vld [vmem:[%s4648_s5 + $0x60] sm:$0xff]  ;;  %2938 = vmatprep.subr.bf16.mxu1 %v2937_v23 }
 0x40d   : > { %3314 = vrsqrt.f32 %v1295_v44  ;;  %v1274_v7 = vpop.xlane.xlu0 %1273  ;;  %v2939_v49 = vpack.c.bf16 %v1672_v52, %v1671_v3 }
 0x40e   : > { %v1324_v48 = vmul.f32 %v4115_v17, %v1309_v46  ;;  %v1288_v31 = vmul.f32 0.03125, %v1274_v7 }
 0x40f   : > { %2940 = vmatpush3.bf16.msra.mxu1 %v2939_v49 }
 0x410   : > { %v3313_v53 = vpop.eup %3312  ;;  %v1332_v55 = vmax.f32 %v1324_v48, 0.0  ;;  %v1296_v56 = vadd.f32 1e-05, %v1288_v31  ;;  %2942 = vmatprep.subr.bf16.mxu1 %v2941_v0  ;;  %v1692_v31 = vld [vmem:[%s4648_s5 + $0x108] sm:$0xff] }
 0x411   : > { %v1310_v57 = vmul.f32 %v3313_v53, %v4034_v6  ;;  %v1387_v50 = vld [vmem:[#allocation2 + $0x12] sm:$0xff] }
 0x412   : > { %1340 = vst.msk [vmem:[#allocation2 + $0x21] sm:$0xff] %vm453_vm0, %v1332_v55  ;;  %3316 = vrsqrt.f32 %v1296_v56  ;;  %v3170_v61 = vpack.i.bf16 %v3835_v35, %v1387_v50  ;;  %v4201_v8 = vld [vmem:[#allocation2 + $0x11] sm:$0xff] }
 0x413   : > { %v1325_v6 = vmul.f32 %v4115_v17, %v1310_v57  ;;  %2944 = vmatpush3.bf16.msra.mxu1 %v2943_v59 }
 0x414   : > { %v1277_v35 = vpop.xlane.xlu1 %1276  ;;  %3171 = vrot.lane.b32.xlu0 %v3170_v61, %s4673_s15 }
 0x415   : > { %v1333_v21 = vmax.f32 %v1325_v6, 0.0  ;;  %v1289_v1 = vmul.f32 0.03125, %v1277_v35 }
 0x417   : > { %v3315_v4 = vpop.eup %3314  ;;  %1341 = vst.msk [vmem:[#allocation2 + $0x31] sm:$0xff] %vm453_vm0, %v1333_v21  ;;  %v1297_v5 = vadd.f32 1e-05, %v1289_v1 }
 0x418   : > { %v1311_v9 = vmul.f32 %v3315_v4, %v4039_v14  ;;  %v4186_v14 = vld [vmem:[#allocation2 + $0x10] sm:$0xff] }
 0x419   : > { %3318 = vrsqrt.f32 %v1297_v5  ;;  %v1280_v10 = vpop.xlane.xlu0 %1279  ;;  %v4177_v11 = vld [vmem:[#allocation2 + $0x20] sm:$0xff] }
 0x41a   : > { %v1326_v13 = vmul.f32 %v4115_v17, %v1311_v9  ;;  %v1290_v29 = vmul.f32 0.03125, %v1280_v10  ;;  %v3175_v12 = vpack.i.bf16 %v3844_v51, %v4177_v11  ;;  %v4182_v22 = vld [vmem:[#allocation2 + $0x21] sm:$0xff] }
 0x41b   : > { %v3180_v62 = vpack.i.bf16 %v4186_v14, %v4182_v22  ;;  %v4195_v30 = vld [vmem:[#allocation2 + $0x22] sm:$0xff] }
 0x41c   : > { %v3317_v20 = vpop.eup %3316  ;;  %v1334_v24 = vmax.f32 %v1326_v13, 0.0  ;;  %v1298_v25 = vadd.f32 1e-05, %v1290_v29  ;;  %3176 = vrot.lane.b32.xlu1 %v3175_v12, %s4674_s16  ;;  %v3185_v36 = vpack.i.bf16 %v4201_v8, %v4195_v30 }
 0x41d   : > { %v1312_v60 = vmul.f32 %v3317_v20, %v4044_v19 }
 0x41e   : > { %1342 = vst.msk [vmem:[#allocation2 + $0x41] sm:$0xff] %vm453_vm0, %v1334_v24  ;;  %3320 = vrsqrt.f32 %v1298_v25  ;;  %v4191_v26 = vld [vmem:[#allocation2 + $0x30] sm:$0xff] }
 0x41f   : > { %v1327_v51 = vmul.f32 %v4115_v17, %v1312_v60  ;;  %v3190_v28 = vpack.i.bf16 %v1387_v50, %v4191_v26  ;;  %v4198_v19 = vld [vmem:[#allocation2 + $0x32] sm:$0xff] }
 0x420   : > { %v1283_v39 = vpop.xlane.xlu1 %1282  ;;  %3181 = vrot.lane.b32.xlu1 %v3180_v62, %s4675_s21  ;;  %v3200_v43 = vpack.i.bf16 %v4182_v22, %v4198_v19  ;;  %v4208_v44 = vld [vmem:[#allocation2 + $0x31] sm:$0xff] }
 0x421   : > { %v1335_v15 = vmax.f32 %v1327_v51, 0.0  ;;  %v1291_v34 = vmul.f32 0.03125, %v1283_v39  ;;  %3191 = vrot.lane.b32.xlu0 %v3190_v28, %s4674_s16  ;;  %v3195_v54 = vpack.i.bf16 %v4177_v11, %v4208_v44 }
 0x423   : > { %v3319_v41 = vpop.eup %3318  ;;  %1343 = vst.msk [vmem:[#allocation2 + $0x51] sm:$0xff] %vm453_vm0, %v1335_v15  ;;  %v1299_v42 = vadd.f32 1e-05, %v1291_v34 }
 0x424   : > { %v1313_v45 = vmul.f32 %v3319_v41, %v4049_v27  ;;  %3186 = vrot.lane.b32.xlu1 %v3185_v36, %s4673_s15  ;;  %v1691_v27 = vld [vmem:[%s4648_s5 + $0x100] sm:$0xff] }
 0x425   : > { %3322 = vrsqrt.f32 %v1299_v42  ;;  %3201 = vrot.lane.b32.xlu0 %v3200_v43, %s4673_s15  ;;  %v4213_v46 = vld [vmem:[#allocation2 + $0x41] sm:$0xff]  ;;  %v4229_v52 = vpack.c.bf16 %v1692_v31, %v1691_v27 }
 0x426   : > { %v1328_v7 = vmul.f32 %v4115_v17, %v1313_v45  ;;  %v3210_v47 = vpack.i.bf16 %v4191_v26, %v4213_v46  ;;  %v4220_v48 = vld [vmem:[#allocation2 + $0x40] sm:$0xff] }
 0x427   : > { %v3205_v53 = vpack.i.bf16 %v4195_v30, %v4220_v48  ;;  %2946 = vmatprep.subr.bf16.mxu1 %v4229_v52  ;;  %v4242_v50 = vld [vmem:[#allocation2 + $0x42] sm:$0xff] }
 0x428   : > { %v3321_v23 = vpop.eup %3320  ;;  %v1336_v3 = vmax.f32 %v1328_v7, 0.0  ;;  %3196 = vrot.lane.b32.xlu1 %v3195_v54, %s4675_s21  ;;  %v3215_v58 = vpack.i.bf16 %v4208_v44, %v4242_v50  ;;  %v1693_v7 = vld [vmem:[%s4648_s5 + $0x110] sm:$0xff]  ;;  %v1694_v54 = vld [vmem:[%s4648_s5 + $0x118] sm:$0xff] }
 0x429   : > { %v1314_v49 = vmul.f32 %v3321_v23, %v4054_v33  ;;  %3211 = vrot.lane.b32.xlu0 %v3210_v47, %s4675_s21 }
 0x42a   : > { %1344 = vst.msk [vmem:[#allocation2 + $0x61] sm:$0xff] %vm453_vm0, %v1336_v3  ;;  %v4236_v55 = vld [vmem:[#allocation2 + $0x50] sm:$0xff] }
 0x42b   : > { %v1329_v56 = vmul.f32 %v4115_v17, %v1314_v49  ;;  %v3220_v57 = vpack.i.bf16 %v4198_v19, %v4236_v55  ;;  %v4245_v33 = vld [vmem:[#allocation2 + $0x52] sm:$0xff] }
 0x42c   : > { %3206 = vrot.lane.b32.xlu1 %v3205_v53, %s4674_s16  ;;  %v3230_v2 = vpack.i.bf16 %v4213_v46, %v4245_v33  ;;  %v4253_v6 = vld [vmem:[#allocation2 + $0x51] sm:$0xff] }
 0x42d   : > { %v1337_v61 = vmax.f32 %v1329_v56, 0.0  ;;  %3221 = vrot.lane.b32.xlu0 %v3220_v57, %s4674_s16  ;;  %v3225_v59 = vpack.i.bf16 %v4220_v48, %v4253_v6  ;;  %v2949_v57 = vpack.c.bf16 %v1694_v54, %v1693_v7 }
 0x42f   : > { %v3323_v63 = vpop.eup %3322  ;;  %1345 = vst.msk [vmem:[#allocation2 + $0x71] sm:$0xff] %vm453_vm0, %v1337_v61 }
 0x430   : > { %v1315_v0 = vmul.f32 %v3323_v63, %v4059_v37  ;;  %3216 = vrot.lane.b32.xlu1 %v3215_v58, %s4673_s15 }
 0x431   : > { %3231 = vrot.lane.b32.xlu0 %v3230_v2, %s4673_s15  ;;  %v4258_v18 = vld [vmem:[#allocation2 + $0x61] sm:$0xff] }
 0x432   : > { %v1330_v35 = vmul.f32 %v4115_v17, %v1315_v0  ;;  %v3240_v21 = vpack.i.bf16 %v4236_v55, %v4258_v18  ;;  %v4265_v1 = vld [vmem:[#allocation2 + $0x60] sm:$0xff] }
 0x433   : > { %v3235_v37 = vpack.i.bf16 %v4242_v50, %v4265_v1  ;;  %v4276_v9 = vld [vmem:[#allocation2 + $0x62] sm:$0xff] }
 0x434   : > { %v1338_v4 = vmax.f32 %v1330_v35, 0.0  ;;  %3226 = vrot.lane.b32.xlu1 %v3225_v59, %s4675_s21  ;;  %v3245_v13 = vpack.i.bf16 %v4253_v6, %v4276_v9 }
 0x435   : > { %3241 = vrot.lane.b32.xlu0 %v3240_v21, %s4675_s21 }
 0x436   : > { %1346 = vst.msk [vmem:[#allocation2 + $0x81] sm:$0xff] %vm453_vm0, %v1338_v4  ;;  %v4272_v5 = vld [vmem:[#allocation2 + $0x70] sm:$0xff] }
 0x437   : > { %v3250_v17 = vpack.i.bf16 %v4245_v33, %v4272_v5  ;;  %v4279_v10 = vld [vmem:[#allocation2 + $0x72] sm:$0xff] }
 0x438   : > { %3236 = vrot.lane.b32.xlu1 %v3235_v37, %s4674_s16  ;;  %v3260_v29 = vpack.i.bf16 %v4258_v18, %v4279_v10  ;;  %v4286_v12 = vld [vmem:[#allocation2 + $0x71] sm:$0xff]  ;;  %v3275_v51 = vpack.i.bf16 %v4279_v10, %v3931_v32 }
 0x439   : > { %3251 = vrot.lane.b32.xlu0 %v3250_v17, %s4674_s16  ;;  %v3255_v24 = vpack.i.bf16 %v4265_v1, %v4286_v12 }
 0x43c   : > { %3246 = vrot.lane.b32.xlu1 %v3245_v13, %s4673_s15 }
 0x43d   : > { %3261 = vrot.lane.b32.xlu0 %v3260_v29, %s4673_s15  ;;  %v4290_v20 = vld [vmem:[#allocation2 + $0x81] sm:$0xff] }
 0x43e   : > { %v3270_v25 = vpack.i.bf16 %v4272_v5, %v4290_v20  ;;  %v1401_v60 = vld [vmem:[#allocation2 + $0x80] sm:$0xff] }
 0x43f   : > { %v3265_v62 = vpack.i.bf16 %v4276_v9, %v1401_v60  ;;  %v4301_v28 = vld [vmem:[#allocation2 + $0x82] sm:$0xff]  ;;  %v3285_v15 = vpack.i.bf16 %v1401_v60, %v3942_v38 }
 0x440   : > { %3256 = vrot.lane.b32.xlu1 %v3255_v24, %s4675_s21  ;;  %v3280_v39 = vpack.i.bf16 %v4286_v12, %v4301_v28 }
 0x441   : > { %3271 = vrot.lane.b32.xlu0 %v3270_v25, %s4675_s21 }
 0x444   : > { %3266 = vrot.lane.b32.xlu1 %v3265_v62, %s4674_s16 }
 0x445   : > { %3276 = vrot.lane.b32.xlu0 %v3275_v51, %s4674_s16  ;;  %s445_s16 = sand.u32 1, %s3441_s26  }
 0x446   : > { %s4602_s29 = scalar_lea.sflag [#allocation4], %s445_s16 }
 0x448   : > { %3281 = vrot.lane.b32.xlu1 %v3280_v39, %s4673_s15  ;;  %s2598_s15 = sld [smem:[#allocation3 + $0x1]] }
 0x44c   : > { %3286 = vrot.lane.b32.xlu1 %v3285_v15, %s4675_s21  ;;  %s2570_s21 = sshll.u32 %s445_s16, 6 }
 0x44d   : > { %s4561_s0 = scalar_lea.vmem [#allocation6], %s2570_s21 }
 0x44e   : > { %s2490_s22 = sshll.u32 %s4561_s0, 4  ;;  %s4595_s22 = int_to_ptr.vmem [resolvable:$true] %s2490_s22 }
 0x44f   : > { %s3383_s20 = scalar_lea.vmem %s4595_s22, 1024 }
 0x450   : > { %p3384_p9 = scmp.ne.s32.totalorder %s4595_s22, %s3383_s20 }
 0x452   : > { %p3385_p10 = pnand %p3384_p9, %p3570_p5 }
 0x454   : > { %p3386_p12 = pneg %p3385_p10 }
 0x486   : > { %v3172_v34 = vpop.permute.xlu0 %3171 }
 0x487   : > { %v3174_v41 = vunpack.i.h.bf16 %v3172_v34  ;;  %v3173_v42 = vunpack.i.l.bf16 %v3172_v34 }
 0x489   : > { %v1611_v38 = vsel %vm453_vm0, %v3947_v40, %v3174_v41  ;;  %v1635_v23 = vsel %vm453_vm0, %v4201_v8, %v3173_v42 }
 0x48e   : > { %v3177_v36 = vpop.permute.xlu1 %3176 }
 0x48f   : > { %v3179_v32 = vunpack.i.h.bf16 %v3177_v36  ;;  %v3178_v43 = vunpack.i.l.bf16 %v3177_v36 }
 0x491   : > { %v1619_v3 = vsel %vm893_vm2, %v1611_v38, %v3179_v32  ;;  %v1643_v49 = vsel %vm893_vm2, %v1635_v23, %v3178_v43 }
 0x492   : > { %v3182_v45 = vpop.permute.xlu1 %3181 }
 0x493   : > { %v3184_v47 = vunpack.i.h.bf16 %v3182_v45  ;;  %v3183_v27 = vunpack.i.l.bf16 %v3182_v45  ;;  %v3192_v31 = vpop.permute.xlu0 %3191 }
 0x494   : > { %v3194_v0 = vunpack.i.h.bf16 %v3192_v31  ;;  %v3193_v35 = vunpack.i.l.bf16 %v3192_v31 }
 0x495   : > { %v1651_v53 = vsel %vm902_vm3, %v1643_v49, %v3183_v27  ;;  %v1627_v56 = vsel %vm902_vm3, %v1619_v3, %v3184_v47 }
 0x496   : > { %v3187_v61 = vpop.permute.xlu1 %3186  ;;  %1790 = vmatprep.mubr.f32.mxu1 %v1651_v53 }
 0x497   : > { %v3189_v58 = vunpack.i.h.bf16 %v3187_v61  ;;  %v3188_v63 = vunpack.i.l.bf16 %v3187_v61  ;;  %v3202_v40 = vpop.permute.xlu0 %3201  ;;  %1791 = vmatmul.mubr.f32.vlgmr.msra.gmra.mrb[8].mxu1 %v1627_v56 }
 0x498   : > { %2948 = vmatpush3.bf16.msra.mxu1 %v4229_v52  ;;  %v3204_v17 = vunpack.i.h.bf16 %v3202_v40  ;;  %v3203_v13 = vunpack.i.l.bf16 %v3202_v40 }
 0x499   : > { %v1636_v8 = vsel %vm453_vm0, %v4182_v22, %v3188_v63  ;;  %v1612_v2 = vsel %vm453_vm0, %v4186_v14, %v3189_v58  ;;  %2950 = vmatprep.subr.bf16.mxu1 %v2949_v57 }
 0x49a   : > { %v3197_v59 = vpop.permute.xlu1 %3196  ;;  %v1644_v29 = vsel %vm893_vm2, %v1636_v8, %v3193_v35  ;;  %v1620_v24 = vsel %vm893_vm2, %v1612_v2, %v3194_v0  ;;  %v1637_v15 = vsel %vm453_vm0, %v4208_v44, %v3203_v13  ;;  %v1613_v34 = vsel %vm453_vm0, %v4177_v11, %v3204_v17 }
 0x49b   : > { %v3199_v21 = vunpack.i.h.bf16 %v3197_v59  ;;  %v3198_v4 = vunpack.i.l.bf16 %v3197_v59  ;;  %v3212_v37 = vpop.permute.xlu0 %3211 }
 0x49c   : > { %2952 = vmatpush3.bf16.msra.mxu1 %v2949_v57  ;;  %v3214_v51 = vunpack.i.h.bf16 %v3212_v37  ;;  %v3213_v39 = vunpack.i.l.bf16 %v3212_v37 }
 0x49d   : > { %v1652_v52 = vsel %vm902_vm3, %v1644_v29, %v3198_v4  ;;  %v1628_v22 = vsel %vm902_vm3, %v1620_v24, %v3199_v21 }
 0x49e   : > { %v3207_v25 = vpop.permute.xlu1 %3206  ;;  %1795 = vmatprep.mubr.f32.mxu1 %v1652_v52 }
 0x49f   : > { %v3209_v14 = vunpack.i.h.bf16 %v3207_v25  ;;  %v3208_v60 = vunpack.i.l.bf16 %v3207_v25  ;;  %v3222_v62 = vpop.permute.xlu0 %3221  ;;  %1796 = vmatmul.mubr.f32.gmra.mrb[10].mxu1 %v1628_v22 }
 0x4a0   : > { %v3224_v38 = vunpack.i.h.bf16 %v3222_v62  ;;  %v3223_v47 = vunpack.i.l.bf16 %v3222_v62 }
 0x4a1   : > { %v1645_v36 = vsel %vm893_vm2, %v1637_v15, %v3208_v60  ;;  %v1621_v41 = vsel %vm893_vm2, %v1613_v34, %v3209_v14 }
 0x4a2   : > { %v3217_v42 = vpop.permute.xlu1 %3216  ;;  %v1653_v32 = vsel %vm902_vm3, %v1645_v36, %v3213_v39  ;;  %v1629_v43 = vsel %vm902_vm3, %v1621_v41, %v3214_v51 }
 0x4a3   : > { %v3219_v45 = vunpack.i.h.bf16 %v3217_v42  ;;  %v3218_v7 = vunpack.i.l.bf16 %v3217_v42  ;;  %v3232_v54 = vpop.permute.xlu0 %3231  ;;  %1800 = vmatprep.mubr.f32.mxu1 %v1653_v32 }
 0x4a4   : > { %1801 = vmatmul.mubr.f32.gmra.mrb[12].mxu1 %v1629_v43  ;;  %v3234_v49 = vunpack.i.h.bf16 %v3232_v54  ;;  %v3233_v53 = vunpack.i.l.bf16 %v3232_v54 }
 0x4a5   : > { %v1638_v44 = vsel %vm453_vm0, %v4213_v46, %v3218_v7  ;;  %v1614_v11 = vsel %vm453_vm0, %v4191_v26, %v3219_v45 }
 0x4a6   : > { %v3227_v27 = vpop.permute.xlu1 %3226  ;;  %v1646_v56 = vsel %vm893_vm2, %v1638_v44, %v3223_v47  ;;  %v1622_v57 = vsel %vm893_vm2, %v1614_v11, %v3224_v38  ;;  %v1639_v0 = vsel %vm453_vm0, %v4253_v6, %v3233_v53  ;;  %v1615_v35 = vsel %vm453_vm0, %v4220_v48, %v3234_v49 }
 0x4a7   : > { %v3229_v31 = vunpack.i.h.bf16 %v3227_v27  ;;  %v3228_v23 = vunpack.i.l.bf16 %v3227_v27  ;;  %v3242_v3 = vpop.permute.xlu0 %3241 }
 0x4a8   : > { %v3244_v8 = vunpack.i.h.bf16 %v3242_v3  ;;  %v3243_v2 = vunpack.i.l.bf16 %v3242_v3 }
 0x4a9   : > { %v1654_v61 = vsel %vm902_vm3, %v1646_v56, %v3228_v23  ;;  %v1630_v58 = vsel %vm902_vm3, %v1622_v57, %v3229_v31 }
 0x4aa   : > { %v3237_v46 = vpop.permute.xlu1 %3236  ;;  %1805 = vmatprep.mubr.f32.mxu1 %v1654_v61 }
 0x4ab   : > { %v3239_v63 = vunpack.i.h.bf16 %v3237_v46  ;;  %v3238_v26 = vunpack.i.l.bf16 %v3237_v46  ;;  %v3252_v40 = vpop.permute.xlu0 %3251  ;;  %1806 = vmatmul.mubr.f32.gmra.mrb[14].mxu1 %v1630_v58 }
 0x4ac   : > { %v3254_v52 = vunpack.i.h.bf16 %v3252_v40  ;;  %v3253_v22 = vunpack.i.l.bf16 %v3252_v40 }
 0x4ad   : > { %v1647_v59 = vsel %vm893_vm2, %v1639_v0, %v3238_v26  ;;  %v1623_v21 = vsel %vm893_vm2, %v1615_v35, %v3239_v63 }
 0x4ae   : > { %v3247_v4 = vpop.permute.xlu1 %3246  ;;  %v1655_v37 = vsel %vm902_vm3, %v1647_v59, %v3243_v2  ;;  %v1631_v17 = vsel %vm902_vm3, %v1623_v21, %v3244_v8 }
 0x4af   : > { %v3249_v13 = vunpack.i.h.bf16 %v3247_v4  ;;  %v3248_v29 = vunpack.i.l.bf16 %v3247_v4  ;;  %v3262_v24 = vpop.permute.xlu0 %3261  ;;  %1810 = vmatprep.mubr.f32.mxu1 %v1655_v37 }
 0x4b0   : > { %1811 = vmatmul.mubr.f32.gmra.mrb[16].mxu1 %v1631_v17  ;;  %v3264_v62 = vunpack.i.h.bf16 %v3262_v24  ;;  %v3263_v51 = vunpack.i.l.bf16 %v3262_v24 }
 0x4b1   : > { %v1640_v6 = vsel %vm453_vm0, %v4258_v18, %v3248_v29  ;;  %v1616_v48 = vsel %vm453_vm0, %v4236_v55, %v3249_v13 }
 0x4b2   : > { %v3257_v25 = vpop.permute.xlu1 %3256  ;;  %v1648_v39 = vsel %vm893_vm2, %v1640_v6, %v3253_v22  ;;  %v1624_v15 = vsel %vm893_vm2, %v1616_v48, %v3254_v52  ;;  %v1641_v45 = vsel %vm453_vm0, %v4286_v12, %v3263_v51  ;;  %v1617_v7 = vsel %vm453_vm0, %v4265_v1, %v3264_v62  ;;  %v2584_v51 = vld [vmem:[%s4649_s6] ss:$0 sm:$0xff] }
 0x4b3   : > { %v3259_v14 = vunpack.i.h.bf16 %v3257_v25  ;;  %v3258_v60 = vunpack.i.l.bf16 %v3257_v25  ;;  %v3272_v34 = vpop.permute.xlu0 %3271 }
 0x4b4   : > { %v3274_v32 = vunpack.i.h.bf16 %v3272_v34  ;;  %v3273_v43 = vunpack.i.l.bf16 %v3272_v34 }
 0x4b5   : > { %v1656_v36 = vsel %vm902_vm3, %v1648_v39, %v3258_v60  ;;  %v1632_v41 = vsel %vm902_vm3, %v1624_v15, %v3259_v14 }
 0x4b6   : > { %v3267_v18 = vpop.permute.xlu1 %3266  ;;  %1815 = vmatprep.mubr.f32.mxu1 %v1656_v36 }
 0x4b7   : > { %v3269_v42 = vunpack.i.h.bf16 %v3267_v18  ;;  %v3268_v55 = vunpack.i.l.bf16 %v3267_v18  ;;  %1816 = vmatmul.mubr.f32.gmra.mrb[18].mxu1 %v1632_v41  ;;  %v3277_v27 = vpop.permute.xlu0 %3276 }
 0x4b8   : > { %v3279_v3 = vunpack.i.h.bf16 %v3277_v27  ;;  %v3278_v49 = vunpack.i.l.bf16 %v3277_v27 }
 0x4b9   : > { %v1649_v54 = vsel %vm893_vm2, %v1641_v45, %v3268_v55  ;;  %v1625_v44 = vsel %vm893_vm2, %v1617_v7, %v3269_v42 }
 0x4ba   : > { %v3282_v11 = vpop.permute.xlu1 %3281  ;;  %v1657_v38 = vsel %vm902_vm3, %v1649_v54, %v3273_v43  ;;  %v1633_v47 = vsel %vm902_vm3, %v1625_v44, %v3274_v32 }
 0x4bb   : > { %v3284_v31 = vunpack.i.h.bf16 %v3282_v11  ;;  %v3283_v23 = vunpack.i.l.bf16 %v3282_v11  ;;  %1820 = vmatprep.mubr.f32.mxu1 %v1657_v38 }
 0x4bc   : > { %1821 = vmatmul.mubr.f32.gmra.mrb[20].mxu1 %v1633_v47 }
 0x4bd   : > { %v1642_v12 = vsel %vm453_vm0, %v4290_v20, %v3283_v23  ;;  %v1618_v1 = vsel %vm453_vm0, %v4272_v5, %v3284_v31  ;;  %v1418_v5 = vld [vmem:[#allocation2 + $0x92] sm:$0xff] }
 0x4be   : > { %v3287_v53 = vpop.permute.xlu1 %3286  ;;  %v1650_v61 = vsel %vm893_vm2, %v1642_v12, %v3278_v49  ;;  %v1626_v58 = vsel %vm893_vm2, %v1618_v1, %v3279_v3 }
 0x4bf   : > { %v3289_v56 = vunpack.i.h.bf16 %v3287_v53  ;;  %v3288_v57 = vunpack.i.l.bf16 %v3287_v53 }
 0x4c1   : > { %v1658_v46 = vsel %vm902_vm3, %v1650_v61, %v3288_v57  ;;  %v1634_v63 = vsel %vm902_vm3, %v1626_v58, %v3289_v56 }
 0x4c2   : > { %1825 = vmatprep.mubr.f32.mxu1 %v1658_v46 }
 0x4c3   : > { %1826 = vmatmul.mubr.f32.gmra.mrb[22].mxu1 %v1634_v63 }
 0x4c4   : > { %2801 = vmatprep.mubr.msk.f32.mxu1 %vm453_vm0, %v4195_v30  ;;  %v1982_v30 = vld [vmem:[%s4650_s7] sm:$0xff] }
 0x4c7   : > { %2802 = vmatmul.mubr.msk.f32.vlgmr.msra.gmra.mrb[24].mxu1 %vm453_vm0, %v4198_v19  ;;  %v1983_v19 = vld [vmem:[%s4650_s7 + $0x8] sm:$0xff] }
 0x4c8   : > { %2804 = vmatprep.mubr.msk.f32.mxu1 %vm453_vm0, %v4242_v50  ;;  %v2954_v50 = vpack.c.bf16 %v1983_v19, %v1982_v30 }
 0x4cb   : > { %2805 = vmatmul.mubr.msk.f32.gmra.mrb[26].mxu1 %vm453_vm0, %v4245_v33  ;;  %v3456_v33 = vmov 0.0|0.0  }
 0x4cc   : > { %2807 = vmatprep.mubr.msk.f32.mxu1 %vm453_vm0, %v4276_v9  ;;  %2953 = vmatprep.subr.bf16.mxu1 %v3456_v33  ;;  %v1984_v9 = vld [vmem:[%s4650_s7 + $0x10] sm:$0xff] }
 0x4cd   : > { %2955 = vmatpush3.bf16.msra.mxu1 %v2954_v50 }
 0x4ce   : > { %2956 = vmatprep.subr.bf16.mxu1 %v3456_v33 }
 0x4cf   : > { %2808 = vmatmul.mubr.msk.f32.gmra.mrb[28].mxu1 %vm453_vm0, %v4279_v10  ;;  %v1985_v10 = vld [vmem:[%s4650_s7 + $0x18] sm:$0xff] }
 0x4d0   : > { %2810 = vmatprep.mubr.msk.f32.mxu1 %vm453_vm0, %v4301_v28  ;;  %v2957_v20 = vpack.c.bf16 %v1985_v10, %v1984_v9 }
 0x4d2   : > { %2958 = vmatpush3.bf16.msra.mxu1 %v2957_v20 }
 0x4d3   : > { %2811 = vmatmul.mubr.msk.f32.gmra.mrb[30].mxu1 %vm453_vm0, %v1418_v5  ;;  %2824 = vmatprep.subr.mxu1 %v3452_v16 }
 0x4d4   : > { %2821 = vmatprep.mubr.msk.f32.mxu1 %vm3457_vm4, %v3452_v16 }
 0x56a   : > { %v2706_v28 = vpop.f32.mrb[8].mxu1 }
 0x56b   : > { %v2707_v26 = vpop.f32.mrb[9].mxu1 }
 0x56c   : > { %v2708_v40 = vadd.f32 %v2707_v26, %v2706_v28 }
 0x56e   : > { %v1793_v36 = vadd.f32 %v2708_v40, %v2584_v51 }
 0x572   : > { %v2709_v8 = vpop.f32.mrb[10].mxu1 }
 0x573   : > { %v2710_v2 = vpop.f32.mrb[11].mxu1 }
 0x574   : > { %v2711_v0 = vadd.f32 %v2710_v2, %v2709_v8 }
 0x576   : > { %v1798_v15 = vadd.f32 %v2711_v0, %v2584_v51 }
 0x577   : > { %v2712_v35 = vpop.f32.mrb[12].mxu1 }
 0x578   : > { %v2713_v59 = vpop.f32.mrb[13].mxu1 }
 0x579   : > { %v2714_v21 = vadd.f32 %v2713_v59, %v2712_v35 }
 0x57b   : > { %v1803_v7 = vadd.f32 %v2714_v21, %v2584_v51 }
 0x57e   : > { %v2715_v4 = vpop.f32.mrb[14].mxu1 }
 0x57f   : > { %v2716_v37 = vpop.f32.mrb[15].mxu1 }
 0x580   : > { %v2717_v17 = vadd.f32 %v2716_v37, %v2715_v4 }
 0x582   : > { %v1808_v55 = vadd.f32 %v2717_v17, %v2584_v51 }
 0x583   : > { %v2718_v13 = vpop.f32.mrb[16].mxu1 }
 0x584   : > { %v2719_v29 = vpop.f32.mrb[17].mxu1 }
 0x585   : > { %v2720_v24 = vadd.f32 %v2719_v29, %v2718_v13 }
 0x587   : > { %v1813_v23 = vadd.f32 %v2720_v24, %v2584_v51 }
 0x58a   : > { %v2721_v6 = vpop.f32.mrb[18].mxu1 }
 0x58b   : > { %v2722_v48 = vpop.f32.mrb[19].mxu1 }
 0x58c   : > { %v2723_v52 = vadd.f32 %v2722_v48, %v2721_v6 }
 0x58e   : > { %v1818_v47 = vadd.f32 %v2723_v52, %v2584_v51 }
 0x58f   : > { %v2724_v22 = vpop.f32.mrb[20].mxu1 }
 0x590   : > { %v2725_v25 = vpop.f32.mrb[21].mxu1 }
 0x591   : > { %v2726_v14 = vadd.f32 %v2725_v25, %v2724_v22 }
 0x593   : > { %v1823_v5 = vadd.f32 %v2726_v14, %v2584_v51 }
 0x596   : > { %v2727_v60 = vpop.f32.mrb[22].mxu1 }
 0x597   : > { %v2728_v62 = vpop.f32.mrb[23].mxu1 }
 0x598   : > { %v2729_v39 = vadd.f32 %v2728_v62, %v2727_v60 }
 0x59a   : > { %v2803_v34 = vpop.f32.mrb[24].mxu1  ;;  %v1828_v57 = vadd.f32 %v2729_v39, %v2584_v51 }
 0x59b   : > { %v4414_v41 = vadd.f32 %v2803_v34, %v1798_v15  ;;  %v1897_v18 = vpop.f32.mrb[25].mxu1 }
 0x59c   : > { %v4416_v42 = vadd.f32 %v1897_v18, %v1793_v36 }
 0x59d   : > { %v1937_v32 = vsel %vm453_vm0, %v4414_v41, 0.0  ;;  %v1960_v30 = vsel %vm453_vm0, %v4414_v41, -inf }
 0x59e   : > { %v1936_v43 = vsel %vm453_vm0, %v4416_v42, 0.0  ;;  %v2806_v45 = vpop.f32.mrb[26].mxu1  ;;  %v1959_v9 = vsel %vm453_vm0, %v4416_v42, -inf }
 0x59f   : > { %v4422_v54 = vadd.f32 %v2806_v45, %v1808_v55  ;;  %v1907_v44 = vpop.f32.mrb[27].mxu1  ;;  %v1938_v38 = vadd.f32 %v1937_v32, %v1936_v43  ;;  %v2067_v32 = vld [vmem:[%s4652_s9] sm:$0x7] }
 0x5a0   : > { %v4424_v11 = vadd.f32 %v1907_v44, %v1803_v7  ;;  %v2593_v43 = vld [vmem:[%s4651_s8] ss:$0 sm:$0xff] }
 0x5a1   : > { %v1941_v49 = vsel %vm453_vm0, %v4422_v54, 0.0  ;;  %v1962_v10 = vsel %vm453_vm0, %v4422_v54, -inf }
 0x5a2   : > { %v1939_v27 = vsel %vm453_vm0, %v4424_v11, 0.0  ;;  %v2809_v31 = vpop.f32.mrb[28].mxu1  ;;  %v1961_v0 = vsel %vm453_vm0, %v4424_v11, -inf }
 0x5a3   : > { %v1940_v12 = vadd.f32 %v1939_v27, %v1938_v38  ;;  %v4428_v1 = vadd.f32 %v2809_v31, %v1818_v47  ;;  %v1917_v3 = vpop.f32.mrb[29].mxu1 }
 0x5a4   : > { %v4432_v53 = vadd.f32 %v1917_v3, %v1813_v23 }
 0x5a5   : > { %v1942_v56 = vadd.f32 %v1941_v49, %v1940_v12  ;;  %v1965_v61 = vsel %vm453_vm0, %v4428_v1, -inf  ;;  %v1945_v20 = vsel %vm453_vm0, %v4428_v1, 0.0 }
 0x5a6   : > { %v1943_v58 = vsel %vm453_vm0, %v4432_v53, 0.0  ;;  %v1963_v46 = vsel %vm453_vm0, %v4432_v53, -inf  ;;  %v2812_v63 = vpop.f32.mrb[30].mxu1  ;;  %v1966_v26 = vmax.f32 %v1960_v30, %v1965_v61  ;;  %v2163_v61 = vlaneseq }
 0x5a7   : > { %v1944_v19 = vadd.f32 %v1943_v58, %v1942_v56  ;;  %v4442_v50 = vadd.f32 %v2812_v63, %v1828_v57  ;;  %v1927_v33 = vpop.f32.mrb[31].mxu1  ;;  %v1964_v40 = vmax.f32 %v1959_v9, %v1963_v46 }
 0x5a8   : > { %v4450_v28 = vadd.f32 %v1927_v33, %v1823_v5  ;;  %v2164_v58 = vshrl.u32 %v2163_v61, 7  ;;  %v2234_v61 = vld [vmem:[%s4654_s11 + $0x18] sm:$0xff] }
 0x5a9   : > { %v1969_v8 = vsel %vm453_vm0, %v4442_v50, -inf  ;;  %v1946_v2 = vadd.f32 %v1945_v20, %v1944_v19  ;;  %v1949_v17 = vsel %vm453_vm0, %v4442_v50, 0.0  ;;  %v1971_v13 = vmax.f32 %v1964_v40, %v1966_v26 }
 0x5aa   : > { %v1970_v35 = vmax.f32 %v1962_v10, %v1969_v8  ;;  %v1947_v59 = vsel %vm453_vm0, %v4450_v28, 0.0  ;;  %v1967_v21 = vsel %vm453_vm0, %v4450_v28, -inf  ;;  %v2165_v46 = vsub.s32 0, %v2164_v58  ;;  %v2235_v58 = vld [vmem:[%s4654_s11 + $0x20] sm:$0xff] }
 0x5ab   : > { %v1948_v4 = vadd.f32 %v1947_v59, %v1946_v2  ;;  %v1968_v37 = vmax.f32 %v1961_v0, %v1967_v21 }
 0x5ad   : > { %v1950_v29 = vadd.f32 %v1949_v17, %v1948_v4  ;;  %v1972_v24 = vmax.f32 %v1968_v37, %v1970_v35  ;;  %v2231_v17 = vld [vmem:[%s4654_s11] sm:$0xff] }
 0x5ae   : > { %2861 = vmatprep.mubr.f32.mxu0 %v2231_v17 }
 0x5af   : > { %v1951_v6 = vrot.slane %v1950_v29, 4  ;;  %v1973_v48 = vmax.f32 %v1971_v13, %v1972_v24 }
 0x5b1   : > { %v1952_v52 = vadd.f32 %v1951_v6, %v1950_v29  ;;  %v1974_v22 = vrot.slane %v1973_v48, 4 }
 0x5b3   : > { %v1953_v25 = vrot.slane %v1952_v52, 2  ;;  %v1975_v14 = vmax.f32 %v1973_v48, %v1974_v22 }
 0x5b5   : > { %v1954_v60 = vadd.f32 %v1953_v25, %v1952_v52  ;;  %v1976_v62 = vrot.slane %v1975_v14, 2 }
 0x5b7   : > { %v1955_v51 = vrot.slane %v1954_v60, 1  ;;  %v1977_v39 = vmax.f32 %v1975_v14, %v1976_v62 }
 0x5b9   : > { %v1956_v15 = vadd.f32 %v1955_v51, %v1954_v60  ;;  %v1978_v34 = vrot.slane %v1977_v39, 1 }
 0x5bb   : > { %v1958_v36 = vmul.f32 0.015625, %v1956_v15  ;;  %v1979_v18 = vmax.f32 %v1977_v39, %v1978_v34 }
 0x5bd   : > { %v1981_v55 = vsel %vm1980_vm5, %v1958_v36, %v1979_v18 }
 0x5be   : > { %2822 = vmatmul.mubr.msk.f32.vlgmr.msra.gmra.mrb[32].mxu1 %vm453_vm0, %v1981_v55 }
 0x5bf   : > { %2826 = vmatprep.mubr.msk.f32.mxu1 %vm3457_vm4, %v3452_v16  ;;  %2825 = vmatpush3.msk.msra.mxu1 %vm2079_vm6, %v2067_v32  ;;  %v2595_v16 = vld [vmem:[%s4653_s10] ss:$0 sm:$0xff] }
 0x691   : > { %v2062_v45 = vpop.f32.mrb[32].mxu1 }
 0x692   : > { %v2063_v7 = vadd.f32 %v2593_v43, %v2062_v45  ;;  %v2823_v44 = vpop.f32.mrb[33].mxu1 }
 0x694   : > { %v2066_v38 = vmax.f32 %v2063_v7, 0.0 }
 0x696   : > { %2827 = vmatmul.mubr.msk.f32.vlgmr.msra.gmra.mrb[34].mxu1 %vm2075_vm7, %v2066_v38 }
 0x769   : > { %v2149_v47 = vpop.f32.mrb[34].mxu1 }
 0x76a   : > { %v2150_v27 = vadd.f32 %v2595_v16, %v2149_v47  ;;  %v2828_v31 = vpop.f32.mrb[35].mxu1 }
 0x76c   : > { %v2154_v23 = vrot.slane %v2150_v27, 1 }
 0x76e   : > { %v2156_v12 = vadd.f32 %v2154_v23, %v2150_v27 }
 0x770   : > { %v2157_v3 = vsub.f32 0.0, %v2156_v12 }
 0x772   : > { %v2158_v49 = vmul.f32 1.442695, %v2157_v3 }
 0x774   : > { %3324 = vpow2.f32 %v2158_v49 }
 0x77e   : > { %v3325_v56 = vpop.eup %3324 }
 0x77f   : > { %v2160_v57 = vadd.f32 1.0, %v3325_v56  ;;  %v2232_v56 = vld [vmem:[%s4654_s11 + $0x8] sm:$0xff] }
 0x781   : > { %3326 = vrcp.f32 %v2160_v57  ;;  %v2233_v57 = vld [vmem:[%s4654_s11 + $0x10] sm:$0xff] }
 0x78b   : > { %v3327_v63 = vpop.eup %3326 }
 0x78c   : > { %v2166_v5 = vrot.slane %v3327_v63, %v2165_v46  ;;  %v2236_v46 = vld [vmem:[%s4654_s11 + $0x28] sm:$0xff]  ;;  %v2237_v63 = vld [vmem:[%s4654_s11 + $0x30] sm:$0xff] }
 0x78e   : > { %v4475_v30 = vmul.f32 %v2166_v5, %v4414_v41  ;;  %v4478_v19 = vmul.f32 %v2166_v5, %v4416_v42  ;;  %v4485_v10 = vmul.f32 %v2166_v5, %v4428_v1  ;;  %v4488_v20 = vmul.f32 %v2166_v5, %v4424_v11 }
 0x78f   : > { %v4495_v26 = vmul.f32 %v2166_v5, %v4442_v50  ;;  %v4498_v40 = vmul.f32 %v2166_v5, %v4422_v54  ;;  %v4505_v8 = vmul.f32 %v2166_v5, %v4432_v53  ;;  %v4512_v2 = vmul.f32 %v2166_v5, %v4450_v28  ;;  %v2238_v5 = vld [vmem:[%s4654_s11 + $0x38] sm:$0xff] }
 0x790   : > { %v2178_v33 = vsel %vm453_vm0, %v4475_v30, -inf  ;;  %v2175_v9 = vsel %vm453_vm0, %v4478_v19, -inf  ;;  %v2190_v41 = vsel %vm453_vm0, %v4485_v10, -inf  ;;  %v2181_v42 = vsel %vm453_vm0, %v4488_v20, -inf }
 0x791   : > { %2179 = vmax.xlane.f32.xlu1 %v2178_v33  ;;  %2176 = vmax.xlane.f32.xlu0 %v2175_v9  ;;  %v2196_v11 = vsel %vm453_vm0, %v4495_v26, -inf  ;;  %v2184_v1 = vsel %vm453_vm0, %v4498_v40, -inf  ;;  %v2202_v50 = vsel %vm453_vm0, %v4475_v30, 0.0  ;;  %v2187_v54 = vsel %vm453_vm0, %v4505_v8, -inf }
 0x792   : > { %v2208_v0 = vsel %vm453_vm0, %v4498_v40, 0.0  ;;  %v2193_v53 = vsel %vm453_vm0, %v4512_v2, -inf  ;;  %v2214_v35 = vsel %vm453_vm0, %v4485_v10, 0.0  ;;  %v2199_v59 = vsel %vm453_vm0, %v4478_v19, 0.0 }
 0x793   : > { %v2220_v28 = vsel %vm453_vm0, %v4495_v26, 0.0  ;;  %v2205_v21 = vsel %vm453_vm0, %v4488_v20, 0.0  ;;  %v2211_v4 = vsel %vm453_vm0, %v4505_v8, 0.0  ;;  %v2217_v37 = vsel %vm453_vm0, %v4512_v2, 0.0 }
 0x794   : > { %v3458_v33 = vmov 0   ;;  %v2345_v9 = vstv %s2344_s17  ;;  %s3459_s17 = smov [#allocation6]  }
 0x795   : > { %2191 = vmax.xlane.f32.xlu1 %v2190_v41  ;;  %2182 = vmax.xlane.f32.xlu0 %v2181_v42  ;;  %v2355_v42 = vstv %s2598_s15  ;;  %s3387_s15 = sshll.u32 %s3459_s17, 4  ;;  %s3388_s15 = int_to_ptr.vmem [resolvable:$false] %s3387_s15 }
 0x796   : > { %3291 = vset.pattern.permute.xlu1 %v3458_v33  ;;  %3290 = vset.pattern.permute.xlu0 %v3458_v33  ;;  %s3389_s21 = scalar_lea.vmem %s3388_s15, 2048  ;;  %p3390_p13 = scmp.lt.s32.totalorder %s4595_s22, %s3388_s15 }
 0x797   : > { %p3391_p0 = scmp.lt.s32.totalorder %s3389_s21, %s3383_s20 }
 0x799   : > { %2197 = vmax.xlane.f32.xlu1 %v2196_v11  ;;  %2185 = vmax.xlane.f32.xlu0 %v2184_v1  ;;  %p3392_p1 = por %p3391_p0, %p3390_p13 }
 0x79b   : > { %p3393_p2 = pnand %p3392_p1, %p3386_p12 }
 0x79d   : > { %2203 = vadd.xlane.f32.xlu1 %v2202_v50  ;;  %2188 = vmax.xlane.f32.xlu0 %v2187_v54 }
 0x7a1   : > { %2209 = vadd.xlane.f32.xlu1 %v2208_v0  ;;  %2194 = vmax.xlane.f32.xlu0 %v2193_v53 }
 0x7a5   : > { %2215 = vadd.xlane.f32.xlu1 %v2214_v35  ;;  %2200 = vadd.xlane.f32.xlu0 %v2199_v59 }
 0x7a9   : > { %2221 = vadd.xlane.f32.xlu1 %v2220_v28  ;;  %2206 = vadd.xlane.f32.xlu0 %v2205_v21 }
 0x7ad   : > { %2212 = vadd.xlane.f32.xlu0 %v2211_v4 }
 0x7b1   : > { %2218 = vadd.xlane.f32.xlu0 %v2217_v37 }
 0x81e   : > { %v2180_v13 = vpop.xlane.xlu1 %2179  ;;  %v2177_v29 = vpop.xlane.xlu0 %2176 }
 0x81f   : > { %v2959_v24 = vpack.c.bf16 %v2180_v13, %v2177_v29 }
 0x821   : > { %2960 = vmatprep.subr.bf16.mxu0 %v2959_v24 }
 0x822   : > { %v2192_v6 = vpop.xlane.xlu1 %2191  ;;  %2962 = vmatpush3.bf16.msra.mxu0 %v2959_v24  ;;  %v2183_v48 = vpop.xlane.xlu0 %2182 }
 0x826   : > { %v2198_v52 = vpop.xlane.xlu1 %2197  ;;  %v2186_v22 = vpop.xlane.xlu0 %2185 }
 0x827   : > { %v2963_v25 = vpack.c.bf16 %v2186_v22, %v2183_v48 }
 0x829   : > { %2964 = vmatprep.subr.bf16.mxu0 %v2963_v25 }
 0x82a   : > { %v2204_v14 = vpop.xlane.xlu1 %2203  ;;  %2966 = vmatpush3.bf16.msra.mxu0 %v2963_v25  ;;  %v2189_v60 = vpop.xlane.xlu0 %2188 }
 0x82b   : > { %v2967_v62 = vpack.c.bf16 %v2192_v6, %v2189_v60  ;;  %v2224_v36 = vmul.f32 0.03125, %v2204_v14 }
 0x82d   : > { %2968 = vmatprep.subr.bf16.mxu0 %v2967_v62 }
 0x82e   : > { %2970 = vmatpush3.bf16.msra.mxu0 %v2967_v62  ;;  %v2195_v51 = vpop.xlane.xlu0 %2194  ;;  %v2210_v15 = vpop.xlane.xlu1 %2209 }
 0x82f   : > { %v2971_v39 = vpack.c.bf16 %v2198_v52, %v2195_v51  ;;  %v2226_v45 = vmul.f32 0.03125, %v2210_v15 }
 0x831   : > { %2972 = vmatprep.subr.bf16.mxu0 %v2971_v39 }
 0x832   : > { %2974 = vmatpush3.bf16.msra.mxu0 %v2971_v39  ;;  %v2201_v34 = vpop.xlane.xlu0 %2200  ;;  %v2216_v32 = vpop.xlane.xlu1 %2215 }
 0x833   : > { %v2223_v18 = vmul.f32 0.03125, %v2201_v34  ;;  %v2228_v16 = vmul.f32 0.03125, %v2216_v32 }
 0x835   : > { %v2975_v55 = vpack.c.bf16 %v2224_v36, %v2223_v18 }
 0x836   : > { %v2207_v43 = vpop.xlane.xlu0 %2206  ;;  %v2222_v27 = vpop.xlane.xlu1 %2221 }
 0x837   : > { %v2225_v7 = vmul.f32 0.03125, %v2207_v43  ;;  %2976 = vmatprep.subr.bf16.mxu0 %v2975_v55  ;;  %v2230_v12 = vmul.f32 0.03125, %v2222_v27 }
 0x838   : > { %2978 = vmatpush3.bf16.msra.mxu0 %v2975_v55 }
 0x839   : > { %v2979_v44 = vpack.c.bf16 %v2226_v45, %v2225_v7 }
 0x83a   : > { %v2213_v38 = vpop.xlane.xlu0 %2212 }
 0x83b   : > { %v2227_v47 = vmul.f32 0.03125, %v2213_v38  ;;  %2980 = vmatprep.subr.bf16.mxu0 %v2979_v44 }
 0x83c   : > { %2982 = vmatpush3.bf16.msra.mxu0 %v2979_v44 }
 0x83d   : > { %v2983_v31 = vpack.c.bf16 %v2228_v16, %v2227_v47 }
 0x83e   : > { %v2219_v23 = vpop.xlane.xlu0 %2218 }
 0x83f   : > { %v2229_v3 = vmul.f32 0.03125, %v2219_v23  ;;  %2984 = vmatprep.subr.bf16.mxu0 %v2983_v31 }
 0x840   : > { %2986 = vmatpush3.bf16.msra.mxu0 %v2983_v31 }
 0x841   : > { %v2987_v49 = vpack.c.bf16 %v2230_v12, %v2229_v3 }
 0x843   : > { %2988 = vmatprep.subr.bf16.mxu0 %v2987_v49 }
 0x844   : > { %2990 = vmatpush3.bf16.msra.mxu0 %v2987_v49 }
 0x847   : > { %2862 = vmatmul.mubr.f32.vlgmr.msra.gmra.mrb[16].mxu0 %v2232_v56 }
 0x848   : > { %2864 = vmatprep.mubr.f32.mxu0 %v2233_v57 }
 0x84b   : > { %2865 = vmatmul.mubr.f32.gmra.mrb[18].mxu0 %v2234_v61 }
 0x84c   : > { %2867 = vmatprep.mubr.f32.mxu0 %v2235_v58 }
 0x84f   : > { %2868 = vmatmul.mubr.f32.gmra.mrb[20].mxu0 %v2236_v46 }
 0x850   : > { %2870 = vmatprep.mubr.f32.mxu0 %v2237_v63 }
 0x853   : > { %2871 = vmatmul.mubr.f32.gmra.mrb[22].mxu0 %v2238_v5 }
 0x91a   : > { %v2863_v41 = vpop.f32.mrb[16].mxu0 }
 0x91b   : > { %v2347_v11 = vmul.f32 %v2863_v41, %v2345_v9  ;;  %v2305_v1 = vpop.f32.mrb[17].mxu0 }
 0x91c   : > { %v2346_v50 = vmul.f32 %v2345_v9, %v2305_v1 }
 0x91d   : > { %v2357_v54 = vadd.f32 %v2355_v42, %v2347_v11 }
 0x91e   : > { %v2356_v0 = vadd.f32 %v2355_v42, %v2346_v50  ;;  %v2866_v53 = vpop.f32.mrb[18].mxu0 }
 0x91f   : > { %v2365_v35 = vsub.f32 0.0, %v2357_v54  ;;  %v2349_v59 = vmul.f32 %v2866_v53, %v2345_v9  ;;  %v2315_v28 = vpop.f32.mrb[19].mxu0 }
 0x920   : > { %v2364_v21 = vsub.f32 0.0, %v2356_v0  ;;  %v2348_v4 = vmul.f32 %v2345_v9, %v2315_v28 }
 0x921   : > { %v2374_v37 = vmul.f32 1.442695, %v2365_v35  ;;  %v2359_v17 = vadd.f32 %v2355_v42, %v2349_v59 }
 0x922   : > { %v2372_v13 = vmul.f32 1.442695, %v2364_v21  ;;  %v2358_v29 = vadd.f32 %v2355_v42, %v2348_v4  ;;  %v2869_v24 = vpop.f32.mrb[20].mxu0 }
 0x923   : > { %3328 = vpow2.f32 %v2374_v37  ;;  %v2367_v6 = vsub.f32 0.0, %v2359_v17  ;;  %v2351_v48 = vmul.f32 %v2869_v24, %v2345_v9  ;;  %v2325_v52 = vpop.f32.mrb[21].mxu0  ;;  %v3360_v37 = vld [vmem:[%s3603_s23 + $0x8] sm:$0xff] }
 0x924   : > { %3330 = vpow2.f32 %v2372_v13  ;;  %v2366_v22 = vsub.f32 0.0, %v2358_v29  ;;  %v2350_v25 = vmul.f32 %v2345_v9, %v2325_v52  ;;  %v3361_v13 = vld [vmem:[%s3603_s23] sm:$0xff] }
 0x925   : > { %v2378_v14 = vmul.f32 1.442695, %v2367_v6  ;;  %v2361_v60 = vadd.f32 %v2355_v42, %v2351_v48 }
 0x926   : > { %v2376_v62 = vmul.f32 1.442695, %v2366_v22  ;;  %v2360_v51 = vadd.f32 %v2355_v42, %v2350_v25  ;;  %v2872_v39 = vpop.f32.mrb[22].mxu0  ;;  %v3363_v22 = vld [vmem:[%s3603_s23 + $0x10] sm:$0xff] }
 0x927   : > { %3332 = vpow2.f32 %v2378_v14  ;;  %v2369_v15 = vsub.f32 0.0, %v2361_v60  ;;  %v2353_v34 = vmul.f32 %v2872_v39, %v2345_v9  ;;  %v2335_v36 = vpop.f32.mrb[23].mxu0  ;;  %v3364_v60 = vld [vmem:[%s3603_s23 + $0x28] sm:$0xff] }
 0x928   : > { %3334 = vpow2.f32 %v2376_v62  ;;  %v2368_v18 = vsub.f32 0.0, %v2360_v51  ;;  %v2352_v55 = vmul.f32 %v2345_v9, %v2335_v36 }
 0x929   : > { %v2382_v32 = vmul.f32 1.442695, %v2369_v15  ;;  %v2363_v7 = vadd.f32 %v2355_v42, %v2353_v34 }
 0x92a   : > { %v2362_v43 = vadd.f32 %v2355_v42, %v2352_v55  ;;  %v2380_v45 = vmul.f32 1.442695, %v2368_v18 }
 0x92b   : > { %3336 = vpow2.f32 %v2382_v32  ;;  %v2371_v23 = vsub.f32 0.0, %v2363_v7 }
 0x92c   : > { %v2370_v44 = vsub.f32 0.0, %v2362_v43  ;;  %3338 = vpow2.f32 %v2380_v45 }
 0x92d   : > { %v3329_v38 = vpop.eup %3328  ;;  %v2386_v56 = vmul.f32 1.442695, %v2371_v23 }
 0x92e   : > { %v3331_v16 = vpop.eup %3330  ;;  %v2389_v47 = vadd.f32 1.0, %v3329_v38  ;;  %v2384_v27 = vmul.f32 1.442695, %v2370_v44 }
 0x92f   : > { %v2388_v31 = vadd.f32 1.0, %v3331_v16 }
 0x930   : > { %3340 = vrcp.f32 %v2389_v47 }
 0x931   : > { %v3333_v12 = vpop.eup %3332  ;;  %3342 = vrcp.f32 %v2388_v31 }
 0x932   : > { %v3335_v3 = vpop.eup %3334  ;;  %v2391_v49 = vadd.f32 1.0, %v3333_v12  ;;  %3344 = vpow2.f32 %v2384_v27 }
 0x933   : > { %v2390_v57 = vadd.f32 1.0, %v3335_v3 }
 0x934   : > { %3346 = vrcp.f32 %v2391_v49 }
 0x935   : > { %v3337_v61 = vpop.eup %3336  ;;  %3348 = vpow2.f32 %v2386_v56 }
 0x936   : > { %v2393_v58 = vadd.f32 1.0, %v3337_v61  ;;  %3350 = vrcp.f32 %v2390_v57  ;;  %v3339_v46 = vpop.eup %3338 }
 0x937   : > { %v2392_v9 = vadd.f32 1.0, %v3339_v46 }
 0x938   : > { %3352 = vrcp.f32 %v2393_v58 }
 0x939   : > { %3354 = vrcp.f32 %v2392_v9 }
 0x93a   : > { %v3341_v63 = vpop.eup %3340 }
 0x93b   : > { %v3343_v5 = vpop.eup %3342  ;;  %2419 = vperm.xlu1 %3291, %v3341_v63  }
 0x93c   : > { %v3345_v33 = vpop.eup %3344  ;;  %2414 = vperm.xlu0 %3290, %v3343_v5  }
 0x93d   : > { %v2394_v42 = vadd.f32 1.0, %v3345_v33 }
 0x93e   : > { %v3347_v41 = vpop.eup %3346 }
 0x93f   : > { %2429 = vperm.xlu1 %3291, %v3347_v41   ;;  %v3349_v11 = vpop.eup %3348  ;;  %3356 = vrcp.f32 %v2394_v42 }
 0x940   : > { %v3351_v1 = vpop.eup %3350  ;;  %v2395_v54 = vadd.f32 1.0, %v3349_v11 }
 0x942   : > { %v3353_v50 = vpop.eup %3352  ;;  %3358 = vrcp.f32 %v2395_v54 }
 0x943   : > { %2424 = vperm.xlu1 %3291, %v3351_v1   ;;  %v3355_v0 = vpop.eup %3354 }
 0x947   : > { %2439 = vperm.xlu1 %3291, %v3353_v50  }
 0x949   : > { %v3357_v53 = vpop.eup %3356 }
 0x94b   : > { %2434 = vperm.xlu1 %3291, %v3355_v0  }
 0x94c   : > { %v3359_v35 = vpop.eup %3358 }
 0x94f   : > { %2444 = vperm.xlu1 %3291, %v3357_v53  }
 0x953   : > { %2449 = vperm.xlu1 %3291, %v3359_v35  }
 0x9ba   : > { %v2420_v59 = vpop.permute.xlu1 %2419 }
 0x9bb   : > { %v2453_v28 = vmul.f32 %v2420_v59, %v4475_v30  ;;  %v2415_v21 = vpop.permute.xlu0 %2414 }
 0x9bc   : > { %v2452_v4 = vmul.f32 %v2415_v21, %v4478_v19  ;;  %v3362_v19 = vld [vmem:[%s3603_s23 + $0x18] sm:$0xff] }
 0x9bd   : > { %v2461_v17 = vadd.f32 %v3360_v37, %v2453_v28 }
 0x9be   : > { %v2460_v29 = vadd.f32 %v3361_v13, %v2452_v4  ;;  %v2430_v24 = vpop.permute.xlu1 %2429 }
 0x9bf   : > { %2469 = vst.msk [vmem:[%s4561_s0 + $0x8] sm:$0xff] %vm453_vm0, %v2461_v17  ;;  %v2455_v30 = vmul.f32 %v2430_v24, %v4498_v40 }
 0x9c0   : > { %2468 = vst.msk [vmem:[%s4561_s0] sm:$0xff] %vm453_vm0, %v2460_v29 }
 0x9c1   : > { %v2463_v6 = vadd.f32 %v3362_v19, %v2455_v30 }
 0x9c2   : > { %v2425_v48 = vpop.permute.xlu1 %2424 }
 0x9c3   : > { %2471 = vst.msk [vmem:[%s4561_s0 + $0x18] sm:$0xff] %vm453_vm0, %v2463_v6  ;;  %v2454_v52 = vmul.f32 %v2425_v48, %v4488_v20  ;;  %v3365_v20 = vld [vmem:[%s3603_s23 + $0x20] sm:$0xff] }
 0x9c5   : > { %v2462_v25 = vadd.f32 %v3363_v22, %v2454_v52 }
 0x9c6   : > { %v2440_v14 = vpop.permute.xlu1 %2439 }
 0x9c7   : > { %2470 = vst.msk [vmem:[%s4561_s0 + $0x10] sm:$0xff] %vm453_vm0, %v2462_v25  ;;  %v2457_v40 = vmul.f32 %v2440_v14, %v4485_v10  ;;  %v3366_v10 = vld [vmem:[%s3603_s23 + $0x30] sm:$0xff] }
 0x9c9   : > { %v2465_v62 = vadd.f32 %v3364_v60, %v2457_v40 }
 0x9ca   : > { %v2435_v51 = vpop.permute.xlu1 %2434 }
 0x9cb   : > { %2473 = vst.msk [vmem:[%s4561_s0 + $0x28] sm:$0xff] %vm453_vm0, %v2465_v62  ;;  %v2456_v39 = vmul.f32 %v2435_v51, %v4505_v8  ;;  %v3367_v8 = vld [vmem:[%s3603_s23 + $0x38] sm:$0xff] }
 0x9cd   : > { %v2464_v15 = vadd.f32 %v3365_v20, %v2456_v39 }
 0x9ce   : > { %v2445_v34 = vpop.permute.xlu1 %2444 }
 0x9cf   : > { %2472 = vst.msk [vmem:[%s4561_s0 + $0x20] sm:$0xff] %vm453_vm0, %v2464_v15  ;;  %v2458_v36 = vmul.f32 %v2445_v34, %v4512_v2 }
 0x9d1   : > { %v2466_v18 = vadd.f32 %v3366_v10, %v2458_v36 }
 0x9d2   : > { %v2450_v55 = vpop.permute.xlu1 %2449 }
 0x9d3   : > { %2474 = vst.msk [vmem:[%s4561_s0 + $0x30] sm:$0xff] %vm453_vm0, %v2466_v18  ;;  %v2459_v32 = vmul.f32 %v2450_v55, %v4495_v26 }
 0x9d5   : > { %v2467_v2 = vadd.f32 %v3367_v8, %v2459_v32 }
 0x9d7   : > { %2475 = vst.msk [vmem:[%s4561_s0 + $0x38] sm:$0xff] %vm453_vm0, %v2467_v2 }
 0x9d8   : > { %3396 = shalt.err (!%p3393_p2)
}
 0x9d9   : > { %s3397_s23 = scalar_lea.hbm %s4593_s30, 1024  ;;  %s3401_s27 = scalar_lea.hbm %s4656_s13, 2048 }
 0x9da   : > { %p3398_p3 = scmp.ne.s32.totalorder %s4593_s30, %s3397_s23  ;;  %p3402_p8 = scmp.lt.u32.totalorder %s4593_s30, %s4656_s13 }
 0x9db   : > { %p3403_p11 = scmp.lt.u32.totalorder %s3401_s27, %s3397_s23  ;;  %p3405_p10 = scmp.lt.u32.totalorder %s3397_s23, %s4593_s30 }
 0x9dc   : > { %p3399_p4 = pnand %p3398_p3, %p3570_p5 }
 0x9dd   : > { %p3404_p9 = por %p3403_p11, %p3402_p8 }
 0x9de   : > { %p3400_p7 = pneg %p3399_p4 }
 0x9df   : > { %p3406_p12 = por %p3405_p10, %p3404_p9 }
 0x9e1   : > { %p3407_p13 = pnand %p3406_p12, %p3400_p7 }
 0x9e3   : > { %3410 = shalt.err (!%p3407_p13)
}
 0x9e4   : > { %s3460_s20 = smov 128   ;;  %s3461_s17 = smov 8  }
 0x9e5   : > { %2995 = dma.vmem_to_hbm [thread:$0]  (%p3570_p5), %s4595_s22, 1024, %s4593_s30, %s4602_s29, %s3460_s20, %s3460_s20, %s3461_s17  }
 0x9e6 PF: > { %p3007_p0 = scmp.ge.s32.totalorder %s3449_s28, 2  ;;  %s2505_s15 = sand.u32 1, %s3437_s25  }
 0x9e7   : > { %s2506_s21 = scalar_lea.sflag [#allocation4], %s2505_s15 }
 0x9e8   : > { %p3002_p1 = pnand %p3007_p0, %p3574_p6 }
 0x9ea   : > { %3432 = dma.done.wait (!%p3002_p1), %s2506_s21, 1024  }
 0x9eb   : > { %3434 = vsyncadd (!%p3002_p1), %s2506_s21, 4294966272  ;;  %s4676_s23 = sld [smem:[#allocation9_spill]]  ;;  %s4677_s27 = sld [smem:[#allocation10_spill]] }
 0x9ec   : > { %p24_p2 = scmp.ge.s32.totalorder %s3557_s14, 4   ;;  %s4678_s25 = smov %s3441_s26 }
 0x9ed   : > { %s4680_s28 = smov %s3557_s14 }
 0x9ee   :  { %26 = sbr.rel (!%p24_p2) target bundleno = 7 (0x7), region = 114 }
 0x9f1   : > { %s4679_s26 = smov %s4676_s23 }
 0x9f5   :  { %2511 = vsyncpa [#allocation4], 1 }
 0x9f6   :  { %2513 = vsyncpa [#allocation4 + $0x1], 1 }
 0x9f7   :  { %2514 = vsyncpa [#allocation5], 1 }
 0x9f8   :  { %2516 = vsyncpa [#allocation5 + $0x1], 1 }

</bundles_post_ra>
